<compile_context>
chip_gen: v7x
topology: tpu7x:2x2x1
jax: 0.10.0
libtpu: 0.0.40
codegen_flags: <defaults>
</compile_context>

<pallas_src>
import jax
import jax.numpy as jnp
from jax.experimental import pallas as pl
from jax.experimental.pallas import tpu as pltpu

EMB_N, EMB_D = 10, 10          # nn.Embedding(10, 10)
EMB_PAD = 16                   # label table rows padded to a sublane multiple
IMG_FLAT = 28 * 28             # 784
F_IN = EMB_D + IMG_FLAT        # 794 (Linear(794, 128))
HID = 128                      # hidden width
OUT_SUB = 8                    # sublane-padded logit rows (row 0 is the real one)


def disc_mlp_kernel(img_ref, lab_ref, w1_ref, lhid_ref, w2t_ref, b2_ref, o_ref):
    """One batch tile of the Discriminator MLP.

    img_ref : (TILE_B, 784)  image activations (f32 or bf16)
    lab_ref : (TILE_B, 1)    int32 labels in [0, 10)
    w1_ref  : (784, 128)     image half of W1 (same dtype as img)
    lhid_ref: (16, 128)      f32, rows 0..9 = emb @ W1[:10] + b1, rows 10..15 zero
    w2t_ref : (8, 128)       f32, row 0 = W2[:, 0], rows 1..7 zero
    b2_ref  : (1, 1)         f32 scalar (SMEM)
    o_ref   : (8, TILE_B)    f32, row 0 = sigmoid(logits) for this tile
    """
    tile_b = img_ref.shape[0]

    # Layer 1, image half: MXU matmul with f32 accumulation.
    h = jnp.dot(img_ref[...], w1_ref[...], preferred_element_type=jnp.float32)

    # Label-embedding contribution done in-kernel: one_hot(labels) @ label_hid
    # (MXU). Replaces the previous host-side gather + (B,128) f32 HBM stream.
    # Out-of-range / garbage labels (e.g. padded last-tile rows) just produce
    # an all-zero one-hot row -> zero bias (no NaN/inf from the label path).
    lab = lab_ref[...]                                              # (tile_b, 1) int32
    cls = jax.lax.broadcasted_iota(jnp.int32, (tile_b, EMB_PAD), 1)
    one_hot = (cls == lab).astype(jnp.float32)                      # (tile_b, 16)
    h = h + jnp.dot(one_hot, lhid_ref[...], preferred_element_type=jnp.float32)
    h = jnp.maximum(h, 0.0)                                         # ReLU (f32)

    # Layer 2 computed transposed: (8,128) x (TILE_B,128)^T -> (8,TILE_B), so
    # the store is lane-dense (batch on lanes) with only 8 padded sublanes.
    zt = jax.lax.dot_general(
        w2t_ref[...], h,
        dimension_numbers=(((1,), (1,)), ((), ())),
        preferred_element_type=jnp.float32)
    zt = zt + b2_ref[0, 0]

    # Exact sigmoid (divide is free at this memory-bound roofline).
    o_ref[...] = 1.0 / (1.0 + jnp.exp(-zt))


def init_params(key):
    """Deterministic parameter init (same shapes as the PyTorch module)."""
    k_emb, k_w1, k_b1, k_w2, k_b2 = jax.random.split(key, 5)
    bound1 = 1.0 / jnp.sqrt(F_IN)
    bound2 = 1.0 / jnp.sqrt(HID)
    return {
        "emb": jax.random.normal(k_emb, (EMB_N, EMB_D), jnp.float32),
        # stored (in_features, out_features) so the kernel computes x @ W
        "w1": jax.random.uniform(k_w1, (F_IN, HID), jnp.float32, -bound1, bound1),
        "b1": jax.random.uniform(k_b1, (1, HID), jnp.float32, -bound1, bound1),
        "w2": jax.random.uniform(k_w2, (HID, 1), jnp.float32, -bound2, bound2),
        "b2": jax.random.uniform(k_b2, (1, 1), jnp.float32, -bound2, bound2),
    }


def prep_disc_params(params, act_dtype=jnp.float32):
    """One-time parameter preparation (hoisted out of the per-call path)."""
    w1 = params["w1"]                                                   # (794, 128)
    # Fold embedding + b1 into a per-label hidden bias table, padded (16, 128).
    label_hid = (params["emb"] @ w1[:EMB_D] + params["b1"]).astype(jnp.float32)
    label_hid = jnp.zeros((EMB_PAD, HID), jnp.float32).at[:EMB_N].set(label_hid)
    # W2 column stored as row 0 of an (8, 128) slab (rows 1..7 zero-padded).
    w2t = jnp.zeros((OUT_SUB, HID), jnp.float32).at[0, :].set(params["w2"][:, 0])
    return {
        "label_hid": label_hid,                                         # (16, 128) f32
        "w1_img": w1[EMB_D:].astype(act_dtype),                         # (784, 128)
        "w2t": w2t,                                                     # (8, 128) f32
        "b2": params["b2"].reshape(1, 1).astype(jnp.float32),           # (1, 1) f32
    }


def _round_up(x, m):
    return ((x + m - 1) // m) * m


def _choose_tile_b(B):
    """Batch tile: big enough to amortize per-step overhead, small enough to
    keep >= 4 grid steps for large B (v7x megacore on the 'parallel' axis)."""
    if B <= 512:
        return _round_up(B, 128)                   # one tile; problem is tiny anyway
    # Largest 128-multiple tile with >= ~4 steps, capped at 2048 rows so f32
    # double-buffered image tiles stay ~13 MiB (under the 32 MiB VMEM limit and
    # well under v7x's 64 MiB physical).
    return max(128, min(2048, _round_up(pl.cdiv(B, 4), 128)))


@jax.jit
def discriminator_forward(prepped, images, labels):
    """images: (B, 1, 28, 28) NCHW; labels: (B,) int in [0, 10). Returns (B, 1) f32."""
    B = images.shape[0]

    # Never cast the dominant (B, 784) image stream in the wrapper; if dtypes
    # disagree, cast the tiny (784,128) weight instead (exact when upcasting).
    img = images.reshape(B, IMG_FLAT)
    w1_img = prepped["w1_img"]
    if w1_img.dtype != img.dtype:
        w1_img = w1_img.astype(img.dtype)

    lab = labels.reshape(B, 1).astype(jnp.int32)   # tiny; gathered in-kernel via one-hot

    tile_b = _choose_tile_b(B)
    grid_b = pl.cdiv(B, tile_b)
    b_pad = grid_b * tile_b   # output padded; last input tile may be partial
    # (partial-tile rows read unspecified data but are row-independent; their
    #  padded outputs are sliced away below).

    out_t = pl.pallas_call(
        disc_mlp_kernel,
        out_shape=jax.ShapeDtypeStruct((OUT_SUB, b_pad), jnp.float32),
        grid=(grid_b,),
        in_specs=[
            pl.BlockSpec((tile_b, IMG_FLAT), lambda i: (i, 0)),        # image stream
            pl.BlockSpec((tile_b, 1), lambda i: (i, 0)),               # labels (int32)
            pl.BlockSpec((IMG_FLAT, HID), lambda i: (0, 0)),           # W1 (resident)
            pl.BlockSpec((EMB_PAD, HID), lambda i: (0, 0)),            # label_hid (resident)
            pl.BlockSpec((OUT_SUB, HID), lambda i: (0, 0)),            # W2^T (resident)
            pl.BlockSpec(memory_space=pltpu.MemorySpace.SMEM),         # b2 scalar
        ],
        out_specs=pl.BlockSpec((OUT_SUB, tile_b), lambda i: (0, i)),   # lane-dense slab
        compiler_params=pltpu.CompilerParams(
            dimension_semantics=("parallel",),        # 2x on v7x megacore when grid_b >= 2
            vmem_limit_bytes=32 * 1024 * 1024,        # headroom over v5e's 16 MiB default
        ),
    )(img, lab, w1_img, prepped["label_hid"], prepped["w2t"], prepped["b2"])

    # Row 0 of the lane-dense slab holds the real sigmoid outputs.
    return out_t[0, :B].reshape(B, 1)


if __name__ == "__main__":
    key = jax.random.PRNGKey(0)
    k_params, k_img = jax.random.split(key)
    params = init_params(k_params)

    B = 2
    images = jax.random.normal(k_img, (B, 1, 28, 28), jnp.float32)  # NCHW like PyTorch
    labels = jnp.array([3, 7], dtype=jnp.int32)

    # Pure-JAX reference (mirrors the PyTorch module exactly, f32).
    emb = jnp.take(params["emb"], labels, axis=0)
    x = jnp.concatenate([emb, images.reshape(B, -1)], axis=-1)
    h = jnp.maximum(x @ params["w1"] + params["b1"], 0.0)
    ref = jax.nn.sigmoid(h @ params["w2"] + params["b2"])

    # ---- f32 path (exact module semantics) ----
    prepped_f32 = prep_disc_params(params, act_dtype=jnp.float32)
    out = jax.block_until_ready(discriminator_forward(prepped_f32, images, labels))
    assert out.shape == (B, 1)
    assert jnp.allclose(out, ref, atol=1e-3), (out, ref)

    # ---- bf16 activation stream (v5e/v6e bandwidth optimization) ----
    # Feed bf16 images directly so no full-batch cast happens outside the kernel.
    prepped_bf16 = prep_disc_params(params, act_dtype=jnp.bfloat16)
    images_bf16 = images.astype(jnp.bfloat16)
    out_bf16 = jax.block_until_ready(
        discriminator_forward(prepped_bf16, images_bf16, labels))
    assert out_bf16.shape == (B, 1)
    assert jnp.allclose(out_bf16, ref, atol=2e-2), (out_bf16, ref)

    print("KERNEL_OK")
</pallas_src>

<mosaic_0001>
module attributes {stable_mosaic.version = 11 : i64} {
  func.func @disc_mlp_kernel(%arg0: i32, %arg1: memref<128x784xf32, #tpu.memory_space<vmem>>, %arg2: memref<128x1xi32, #tpu.memory_space<vmem>>, %arg3: memref<784x128xf32, #tpu.memory_space<vmem>>, %arg4: memref<16x128xf32, #tpu.memory_space<vmem>>, %arg5: memref<8x128xf32, #tpu.memory_space<vmem>>, %arg6: memref<1x1xf32, #tpu.memory_space<smem>>, %arg7: memref<8x128xf32, #tpu.memory_space<vmem>>) attributes {dimension_semantics = [#tpu.dimension_semantics<parallel>], iteration_bounds = array<i64: 1>, scalar_prefetch = 0 : i64, scratch_operands = 0 : i64, tpu.core_type = #tpu.core_type<tc>, window_params = [{transform_indices = @transform_0, window_bounds = array<i64: 128, 784>}, {transform_indices = @transform_1, window_bounds = array<i64: 128, 1>}, {pipeline_mode = #tpu.pipeline_mode<synchronous>, transform_indices = @transform_2, window_bounds = array<i64: 784, 128>}, {pipeline_mode = #tpu.pipeline_mode<synchronous>, transform_indices = @transform_3, window_bounds = array<i64: 16, 128>}, {pipeline_mode = #tpu.pipeline_mode<synchronous>, transform_indices = @transform_4, window_bounds = array<i64: 8, 128>}, {transform_indices = @transform_5, window_bounds = array<i64: 1, 1>}, {transform_indices = @transform_6, window_bounds = array<i64: 8, 128>}]} {
    %c0 = arith.constant 0 : index
    %c0_0 = arith.constant 0 : index
    %0 = vector.load %arg1[%c0, %c0_0] : memref<128x784xf32, #tpu.memory_space<vmem>>, vector<128x784xf32>
    %c0_1 = arith.constant 0 : index
    %c0_2 = arith.constant 0 : index
    %1 = vector.load %arg3[%c0_1, %c0_2] : memref<784x128xf32, #tpu.memory_space<vmem>>, vector<784x128xf32>
    %cst = arith.constant dense<0.000000e+00> : vector<128x128xf32>
    %2 = tpu.matmul %0, %1, %cst {dimension_numbers = #tpu.dot_dimension_numbers<[1], [0], [0], [1], [0, 0, 1, 1], [], []>} : vector<128x784xf32>, vector<784x128xf32>, vector<128x128xf32> -> vector<128x128xf32>
    %c0_3 = arith.constant 0 : index
    %c0_4 = arith.constant 0 : index
    %3 = vector.load %arg2[%c0_3, %c0_4] : memref<128x1xi32, #tpu.memory_space<vmem>>, vector<128x1xi32>
    %4 = tpu.iota {dimensions = array<i32: 1>} : vector<128x16xi32>
    %5 = vector.broadcast %3 : vector<128x1xi32> to vector<128x16xi32>
    %6 = arith.cmpi eq, %4, %5 : vector<128x16xi32>
    %7 = arith.extui %6 : vector<128x16xi1> to vector<128x16xi32>
    %8 = arith.sitofp %7 : vector<128x16xi32> to vector<128x16xf32>
    %c0_5 = arith.constant 0 : index
    %c0_6 = arith.constant 0 : index
    %9 = vector.load %arg4[%c0_5, %c0_6] : memref<16x128xf32, #tpu.memory_space<vmem>>, vector<16x128xf32>
    %cst_7 = arith.constant dense<0.000000e+00> : vector<128x128xf32>
    %10 = tpu.matmul %8, %9, %cst_7 {dimension_numbers = #tpu.dot_dimension_numbers<[1], [0], [0], [1], [0, 0, 1, 1], [], []>} : vector<128x16xf32>, vector<16x128xf32>, vector<128x128xf32> -> vector<128x128xf32>
    %11 = arith.addf %2, %10 : vector<128x128xf32>
    %cst_8 = arith.constant 0.000000e+00 : f32
    %12 = vector.broadcast %cst_8 : f32 to vector<128x128xf32>
    %13 = arith.maximumf %11, %12 : vector<128x128xf32>
    %c0_9 = arith.constant 0 : index
    %c0_10 = arith.constant 0 : index
    %14 = vector.load %arg5[%c0_9, %c0_10] : memref<8x128xf32, #tpu.memory_space<vmem>>, vector<8x128xf32>
    %cst_11 = arith.constant dense<0.000000e+00> : vector<8x128xf32>
    %15 = tpu.matmul %14, %13, %cst_11 {dimension_numbers = #tpu.dot_dimension_numbers<[1], [1], [0], [0], [0, 0, 1, 0], [], []>} : vector<8x128xf32>, vector<128x128xf32>, vector<8x128xf32> -> vector<8x128xf32>
    %c0_12 = arith.constant 0 : index
    %c0_13 = arith.constant 0 : index
    %16 = memref.load %arg6[%c0_12, %c0_13] : memref<1x1xf32, #tpu.memory_space<smem>>
    %17 = vector.broadcast %16 : f32 to vector<8x128xf32>
    %18 = arith.addf %15, %17 : vector<8x128xf32>
    %cst_14 = arith.constant 0.000000e+00 : f32
    %19 = vector.broadcast %cst_14 : f32 to vector<8x128xf32>
    %20 = arith.subf %19, %18 : vector<8x128xf32>
    %21 = math.exp %20 : vector<8x128xf32>
    %cst_15 = arith.constant 1.000000e+00 : f32
    %22 = vector.broadcast %cst_15 : f32 to vector<8x128xf32>
    %23 = arith.addf %22, %21 : vector<8x128xf32>
    %cst_16 = arith.constant 1.000000e+00 : f32
    %24 = vector.broadcast %cst_16 : f32 to vector<8x128xf32>
    %25 = arith.divf %24, %23 : vector<8x128xf32>
    %c0_17 = arith.constant 0 : index
    %c0_18 = arith.constant 0 : index
    %26 = vector.load %arg7[%c0_17, %c0_18] : memref<8x128xf32, #tpu.memory_space<vmem>>, vector<8x128xf32>
    tpu.vector_store %arg7[%c0_17, %c0_18], %25 {strides = array<i32>} : memref<8x128xf32, #tpu.memory_space<vmem>>, vector<8x128xf32>,
    return
  }
  func.func @transform_0(%arg0: i32) -> (i32, i32) {
    %c0_i32 = arith.constant 0 : i32
    %c0_i32_0 = arith.constant 0 : i32
    return %arg0, %c0_i32 : i32, i32
  }
  func.func @transform_1(%arg0: i32) -> (i32, i32) {
    %c0_i32 = arith.constant 0 : i32
    %c0_i32_0 = arith.constant 0 : i32
    return %arg0, %c0_i32 : i32, i32
  }
  func.func @transform_2(%arg0: i32) -> (i32, i32) {
    %c0_i32 = arith.constant 0 : i32
    %c0_i32_0 = arith.constant 0 : i32
    %c0_i32_1 = arith.constant 0 : i32
    return %c0_i32, %c0_i32_0 : i32, i32
  }
  func.func @transform_3(%arg0: i32) -> (i32, i32) {
    %c0_i32 = arith.constant 0 : i32
    %c0_i32_0 = arith.constant 0 : i32
    %c0_i32_1 = arith.constant 0 : i32
    return %c0_i32, %c0_i32_0 : i32, i32
  }
  func.func @transform_4(%arg0: i32) -> (i32, i32) {
    %c0_i32 = arith.constant 0 : i32
    %c0_i32_0 = arith.constant 0 : i32
    %c0_i32_1 = arith.constant 0 : i32
    return %c0_i32, %c0_i32_0 : i32, i32
  }
  func.func @transform_5(%arg0: i32) -> (i32, i32) {
    %c0_i32 = arith.constant 0 : i32
    %c0_i32_0 = arith.constant 0 : i32
    %c0_i32_1 = arith.constant 0 : i32
    return %c0_i32, %c0_i32_0 : i32, i32
  }
  func.func @transform_6(%arg0: i32) -> (i32, i32) {
    %c0_i32 = arith.constant 0 : i32
    %c0_i32_0 = arith.constant 0 : i32
    return %c0_i32, %arg0 : i32, i32
  }
}

</mosaic_0001>

<bundles_post_ra>
// kernel: discriminator_forward.1
= control target key start
LH: loop header
LB: loop body
LE: loop exit
PB: predicated region body
PF: predicated region fallthrough
CT: control target
= control target key end

     0   :  { %12 = vsyncpa [#allocation4], 0  ;;  %s3501_s21 = smov [#allocation3]   ;;  %s4382_s0 = inlined_call_operand.vmem [shape: f32[2,784], index: 0, kind: input, shape index: {}]   ;;  %s4383_s1 = inlined_call_operand.vmem [shape: s32[2,1], index: 1, kind: input, shape index: {}]   ;;  %s4384_s2 = inlined_call_operand.hbm [shape: f32[784,128], index: 2, kind: input, shape index: {}]   ;;  %s4385_s3 = inlined_call_operand.vmem [shape: f32[16,128], index: 3, kind: input, shape index: {}]   ;;  %s4386_s4 = inlined_call_operand.vmem [shape: f32[8,128], index: 4, kind: input, shape index: {}]   ;;  %s4387_s5 = inlined_call_operand.<no memory space> [shape: f32[1,1], index: 5, kind: input, shape index: {}]   ;;  %s4388_s6 = inlined_call_operand.vmem [shape: f32[8,128], index: 6, kind: output, shape index: {}]  }
   0x1   :  { %s22_s22 = sshll.u32 %s3501_s21, 4  ;;  %s3477_s25 = scalar_lea.hbm %s4384_s2, 12544  ;;  %s23_s22 = int_to_ptr.vmem [resolvable:$true] %s22_s22 }
   0x2   :  { %p3478_p0 = scmp.ne.s32.totalorder %s4384_s2, %s3477_s25  ;;  %p3481_p1 = scmp.lt.u32.totalorder %s3477_s25, %s4384_s2 }
   0x4   :  { %p3483_p2 = pnand %p3481_p1, %p3478_p0 }
   0x6   :  { %3486 = shalt.err (!%p3483_p2)
}
   0x7   :  { %s3487_s30 = scalar_lea.vmem %s23_s22, 12544  ;;  %p3492_p4 = scmp.lt.s32.totalorder %s23_s22, %s23_s22 }
   0x8   :  { %p3488_p3 = scmp.ne.s32.totalorder %s23_s22, %s3487_s30  ;;  %p3493_p5 = scmp.lt.s32.totalorder %s3487_s30, %s3487_s30 }
   0xa   :  { %p3494_p6 = por %p3493_p5, %p3492_p4 }
   0xc   :  { %p3495_p7 = pnand %p3494_p6, %p3488_p3 }
   0xe   :  { %3498 = shalt.err (!%p3495_p7)
}
   0xf   :  { %s3502_s7 = smov 128   ;;  %s3503_s8 = smov 8  }
  0x10   :  { %28 = dma.hbm_to_vmem [thread:$0]  %s4384_s2, 12544, %s23_s22, [#allocation4], %s3502_s7, %s3502_s7, %s3503_s8  }
  0x11   :  { %3499 = dma.done.wait [#allocation4], 12544  }
  0x12   :  { %3500 = vsyncadd [#allocation4], 4294954752  ;;  %v3504_v0 = vmov 0   ;;  %v266_v1 = vld [vmem:[%s4383_s1 + $0x10] sm:$0xff]  ;;  %v264_v2 = vld [vmem:[%s4383_s1] sm:$0xff]  ;;  %v280_v17 = vlaneseq  ;;  %vm380_vm0 = vcmask 130048  }
  0x13   :  { %3280 = vset.pattern.permute.xlu1 %v3504_v0  ;;  %3279 = vset.pattern.permute.xlu0 %v3504_v0  ;;  %v267_v3 = vld [vmem:[%s4383_s1 + $0x18] sm:$0xff]  ;;  %v265_v4 = vld [vmem:[%s4383_s1 + $0x8] sm:$0xff]  ;;  %v268_v6 = vld [vmem:[%s4383_s1 + $0x20] sm:$0xff]  ;;  %v3505_v18 = vmov 1983009808  }
  0x14   :  { %289 = vperm.xlu1 %3280, %v266_v1   ;;  %283 = vperm.xlu0 %3279, %v264_v2   ;;  %v269_v5 = vld [vmem:[%s4383_s1 + $0x28] sm:$0xff]  ;;  %v182_v7 = vld [vmem:[#allocation3 + $0x80] sm:$0xff]  ;;  %v184_v12 = vld [vmem:[#allocation3 + $0x90] sm:$0xff]  ;;  %v707_v19 = vunpack.c.l.s4 %v3505_v18  ;;  %v710_v30 = vshrl.u32 %v280_v17, 7 }
  0x15   :  { %v183_v8 = vld [vmem:[#allocation3 + $0x88] sm:$0xff]  ;;  %v166_v10 = vld [vmem:[#allocation3] sm:$0xff]  ;;  %v185_v14 = vld [vmem:[#allocation3 + $0x98] sm:$0xff] }
  0x16   :  { %v3083_v9 = vpack.c.bf16 %v183_v8, %v182_v7  ;;  %v167_v11 = vld [vmem:[#allocation3 + $0x8] sm:$0xff]  ;;  %v168_v15 = vld [vmem:[#allocation3 + $0x10] sm:$0xff]  ;;  %v169_v16 = vld [vmem:[#allocation3 + $0x18] sm:$0xff]  ;;  %v3087_v20 = vpack.c.bf16 %v185_v14, %v184_v12  ;;  %v708_v29 = vunpack.c.0.s8 %v707_v19 }
  0x17   :  { %v3085_v13 = vpack.c.bf16 %v167_v11, %v166_v10  ;;  %v186_v21 = vld [vmem:[#allocation3 + $0xa0] sm:$0xff]  ;;  %v187_v22 = vld [vmem:[#allocation3 + $0xa8] sm:$0xff]  ;;  %v271_v23 = vld [vmem:[%s4383_s1 + $0x38] sm:$0xff]  ;;  %v3089_v25 = vpack.c.bf16 %v169_v16, %v168_v15 }
  0x18   :  { %292 = vperm.xlu1 %3280, %v267_v3   ;;  %286 = vperm.xlu0 %3279, %v265_v4   ;;  %v270_v24 = vld [vmem:[%s4383_s1 + $0x30] sm:$0xff]  ;;  %v3091_v26 = vpack.c.bf16 %v187_v22, %v186_v21  ;;  %v170_v27 = vld [vmem:[#allocation3 + $0x20] sm:$0xff]  ;;  %v171_v28 = vld [vmem:[#allocation3 + $0x28] sm:$0xff]  ;;  %v3587_v41 = vsub.s32 %v708_v29, %v710_v30 }
  0x19   :  { %3084 = vmatprep.subr.bf16.mxu1 %v3083_v9  ;;  %v188_v31 = vld [vmem:[#allocation3 + $0xb0] sm:$0xff]  ;;  %v189_v32 = vld [vmem:[#allocation3 + $0xb8] sm:$0xff]  ;;  %v273_v33 = vld [vmem:[%s4383_s1 + $0x48] sm:$0xff]  ;;  %v3093_v35 = vpack.c.bf16 %v171_v28, %v170_v27 }
  0x1a   :  { %3086 = vmatpush3.bf16.msra.mxu1 %v3085_v13  ;;  %v272_v34 = vld [vmem:[%s4383_s1 + $0x40] sm:$0xff]  ;;  %v172_v36 = vld [vmem:[#allocation3 + $0x30] sm:$0xff]  ;;  %v3095_v37 = vpack.c.bf16 %v189_v32, %v188_v31  ;;  %v173_v38 = vld [vmem:[#allocation3 + $0x38] sm:$0xff] }
  0x1b   :  { %3088 = vmatprep.subr.bf16.mxu1 %v3087_v20  ;;  %v190_v39 = vld [vmem:[#allocation3 + $0xc0] sm:$0xff]  ;;  %v191_v40 = vld [vmem:[#allocation3 + $0xc8] sm:$0xff]  ;;  %v275_v42 = vld [vmem:[%s4383_s1 + $0x58] sm:$0xff]  ;;  %v3097_v46 = vpack.c.bf16 %v173_v38, %v172_v36 }
  0x1c   :  { %298 = vperm.xlu1 %3280, %v269_v5   ;;  %295 = vperm.xlu0 %3279, %v268_v6   ;;  %v274_v43 = vld [vmem:[%s4383_s1 + $0x50] sm:$0xff]  ;;  %v174_v44 = vld [vmem:[#allocation3 + $0x40] sm:$0xff]  ;;  %v175_v47 = vld [vmem:[#allocation3 + $0x48] sm:$0xff]  ;;  %v3099_v49 = vpack.c.bf16 %v191_v40, %v190_v39 }
  0x1d   :  { %v3281_v45 = vld [vmem:[%s4382_s0] ss:$14 sps:$4 sm:$0xff]   ;;  %v3284_v48 = vld [vmem:[%s4382_s0 + $0x1c] ss:$14 sps:$4 sm:$0xff]   ;;  %v3101_v56 = vpack.c.bf16 %v175_v47, %v174_v44  ;;  %v3287_v7 = vld [vmem:[%s4382_s0 + $0x38] ss:$14 sps:$4 sm:$0xff]  }
  0x1e   :  { %3090 = vmatpush3.bf16.msra.mxu1 %v3089_v25  ;;  %v3602_v50 = vrot.slane %v3281_v45, %v3587_v41  ;;  %v277_v51 = vld [vmem:[%s4383_s1 + $0x68] sm:$0xff]  ;;  %v276_v52 = vld [vmem:[%s4383_s1 + $0x60] sm:$0xff]  ;;  %v192_v53 = vld [vmem:[#allocation3 + $0xd0] sm:$0xff]  ;;  %v3611_v55 = vrot.slane %v3284_v48, %v3587_v41  ;;  %v783_v16 = vrot.slane %v3287_v7, %v3587_v41 }
  0x1f   :  { %3092 = vmatprep.subr.bf16.mxu1 %v3091_v26  ;;  %v193_v54 = vld [vmem:[#allocation3 + $0xd8] sm:$0xff]  ;;  %v176_v57 = vld [vmem:[#allocation3 + $0x50] sm:$0xff]  ;;  %v194_v63 = vld [vmem:[#allocation3 + $0xe0] sm:$0xff] }
  0x20   :  { %304 = vperm.xlu1 %3280, %v271_v23   ;;  %301 = vperm.xlu0 %3279, %v270_v24   ;;  %v177_v58 = vld [vmem:[#allocation3 + $0x58] sm:$0xff]  ;;  %v735_v59 = vcombine.high %v3602_v50, %v3611_v55  ;;  %v3103_v60 = vpack.c.bf16 %v193_v54, %v192_v53  ;;  %v278_v62 = vld [vmem:[%s4383_s1 + $0x70] sm:$0xff]  ;;  %v195_v0 = vld [vmem:[#allocation3 + $0xe8] sm:$0xff]  ;;  %v734_v26 = vcombine.low %v3602_v50, %v3611_v55 }
  0x21   :  { %v279_v61 = vld [vmem:[%s4383_s1 + $0x78] sm:$0xff]  ;;  %v178_v1 = vld [vmem:[#allocation3 + $0x60] sm:$0xff]  ;;  %v179_v2 = vld [vmem:[#allocation3 + $0x68] sm:$0xff]  ;;  %v3105_v3 = vpack.c.bf16 %v177_v58, %v176_v57  ;;  %v3107_v6 = vpack.c.bf16 %v195_v0, %v194_v63 }
  0x22   :  { %3094 = vmatpush3.bf16.msra.mxu1 %v3093_v35  ;;  %2030 = vmatprep.mubr.f32.mxu1 %v735_v59  ;;  %v196_v4 = vld [vmem:[#allocation3 + $0xf0] sm:$0xff]  ;;  %v197_v5 = vld [vmem:[#allocation3 + $0xf8] sm:$0xff]  ;;  %v3109_v9 = vpack.c.bf16 %v179_v2, %v178_v1  ;;  %v378_v12 = vld [vmem:[%s4385_s3] sm:$0xff] }
  0x23   :  { %3096 = vmatprep.subr.bf16.mxu1 %v3095_v37  ;;  %v3289_v8 = vld [vmem:[%s4382_s0 + $0x54] ss:$14 sps:$4 sm:$0xff]   ;;  %v181_v11 = vld [vmem:[#allocation3 + $0x78] sm:$0xff]  ;;  %v3111_v13 = vpack.c.bf16 %v197_v5, %v196_v4  ;;  %v379_v14 = vld [vmem:[%s4385_s3 + $0x8] sm:$0xff] }
  0x24   :  { %310 = vperm.xlu1 %3280, %v273_v33   ;;  %307 = vperm.xlu0 %3279, %v272_v34   ;;  %v180_v10 = vld [vmem:[#allocation3 + $0x70] sm:$0xff]  ;;  %v797_v18 = vrot.slane %v3289_v8, %v3587_v41  ;;  %v3293_v19 = vld [vmem:[%s4382_s0 + $0x8c] ss:$14 sps:$4 sm:$0xff]   ;;  %v3079_v20 = vpack.c.bf16 %v379_v14, %v378_v12  ;;  %v214_v21 = vld [vmem:[#allocation3 + $0x180] sm:$0xff] }
  0x25   :  { %v3291_v15 = vld [vmem:[%s4382_s0 + $0x70] ss:$14 sps:$4 sm:$0xff]   ;;  %v215_v22 = vld [vmem:[#allocation3 + $0x188] sm:$0xff]  ;;  %v3113_v23 = vpack.c.bf16 %v181_v11, %v180_v10  ;;  %v868_v32 = vrot.slane %v3293_v19, %v3587_v41 }
  0x26   :  { %3098 = vmatpush3.bf16.msra.mxu1 %v3097_v46  ;;  %v3115_v24 = vpack.c.bf16 %v215_v22, %v214_v21  ;;  %3080 = vmatprep.subr.bf16.mxu0 %v3079_v20  ;;  %v246_v25 = vld [vmem:[#allocation3 + $0x280] sm:$0xff]  ;;  %v806_v27 = vcombine.high %v783_v16, %v797_v18  ;;  %v247_v28 = vld [vmem:[#allocation3 + $0x288] sm:$0xff]  ;;  %v854_v31 = vrot.slane %v3291_v15, %v3587_v41  ;;  %v248_v39 = vld [vmem:[#allocation3 + $0x290] sm:$0xff] }
  0x27   :  { %3100 = vmatprep.subr.bf16.mxu1 %v3099_v49  ;;  %3082 = vmatpush3.bf16.msra.mxu0 %v3079_v20  ;;  %v230_v29 = vld [vmem:[#allocation3 + $0x200] sm:$0xff]  ;;  %v231_v30 = vld [vmem:[#allocation3 + $0x208] sm:$0xff]  ;;  %v3147_v35 = vpack.c.bf16 %v247_v28, %v246_v25  ;;  %v805_v37 = vcombine.low %v783_v16, %v797_v18  ;;  %v249_v40 = vld [vmem:[#allocation3 + $0x298] sm:$0xff] }
  0x28   :  { %316 = vperm.xlu1 %3280, %v275_v42   ;;  %313 = vperm.xlu0 %3279, %v274_v43   ;;  %v3295_v33 = vld [vmem:[%s4382_s0 + $0xa8] ss:$14 sps:$4 sm:$0xff]   ;;  %v3297_v34 = vld [vmem:[%s4382_s0 + $0xc4] ss:$14 sps:$4 sm:$0xff]   ;;  %v3149_v36 = vpack.c.bf16 %v231_v30, %v230_v29  ;;  %v3299_v38 = vld [vmem:[%s4382_s0 + $0xe0] ss:$14 sps:$4 sm:$0xff]   ;;  %v877_v42 = vcombine.high %v854_v31, %v868_v32  ;;  %v3151_v48 = vpack.c.bf16 %v249_v40, %v248_v39 }
  0x29   :  { %3116 = vmatprep.subr.bf16.mxu0 %v3115_v24  ;;  %v925_v43 = vrot.slane %v3295_v33, %v3587_v41  ;;  %v939_v44 = vrot.slane %v3297_v34, %v3587_v41  ;;  %v3301_v45 = vld [vmem:[%s4382_s0 + $0xfc] ss:$14 sps:$4 sm:$0xff]   ;;  %v232_v46 = vld [vmem:[#allocation3 + $0x210] sm:$0xff]  ;;  %v876_v50 = vcombine.low %v854_v31, %v868_v32  ;;  %v996_v54 = vrot.slane %v3299_v38, %v3587_v41  ;;  %v234_v58 = vld [vmem:[#allocation3 + $0x220] sm:$0xff] }
  0x2a   :  { %3102 = vmatpush3.bf16.msra.mxu1 %v3101_v56  ;;  %v233_v47 = vld [vmem:[#allocation3 + $0x218] sm:$0xff]  ;;  %v1010_v55 = vrot.slane %v3301_v45, %v3587_v41  ;;  %v250_v56 = vld [vmem:[#allocation3 + $0x2a0] sm:$0xff]  ;;  %v251_v57 = vld [vmem:[#allocation3 + $0x2a8] sm:$0xff] }
  0x2b   :  { %3104 = vmatprep.subr.bf16.mxu1 %v3103_v60  ;;  %v3153_v49 = vpack.c.bf16 %v233_v47, %v232_v46  ;;  %v948_v53 = vcombine.high %v925_v43, %v939_v44  ;;  %v3155_v59 = vpack.c.bf16 %v251_v57, %v250_v56  ;;  %v235_v60 = vld [vmem:[#allocation3 + $0x228] sm:$0xff]  ;;  %v3307_v2 = vld [vmem:[%s4382_s0 + $0x150] ss:$14 sps:$4 sm:$0xff]  }
  0x2c   :  { %322 = vperm.xlu1 %3280, %v277_v51   ;;  %319 = vperm.xlu0 %3279, %v276_v52   ;;  %v3303_v51 = vld [vmem:[%s4382_s0 + $0x118] ss:$14 sps:$4 sm:$0xff]   ;;  %v3305_v52 = vld [vmem:[%s4382_s0 + $0x134] ss:$14 sps:$4 sm:$0xff]   ;;  %v1019_v63 = vcombine.high %v996_v54, %v1010_v55  ;;  %v1018_v10 = vcombine.low %v996_v54, %v1010_v55  ;;  %v1138_v12 = vrot.slane %v3307_v2, %v3587_v41  ;;  %v3317_v24 = vld [vmem:[%s4382_s0 + $0x1dc] ss:$14 sps:$4 sm:$0xff]  }
  0x2d   :  { %v1067_v0 = vrot.slane %v3303_v51, %v3587_v41  ;;  %v1081_v1 = vrot.slane %v3305_v52, %v3587_v41  ;;  %v252_v4 = vld [vmem:[#allocation3 + $0x2b0] sm:$0xff]  ;;  %v253_v5 = vld [vmem:[#allocation3 + $0x2b8] sm:$0xff]  ;;  %v254_v16 = vld [vmem:[#allocation3 + $0x2c0] sm:$0xff]  ;;  %v1294_v34 = vrot.slane %v3317_v24, %v3587_v41 }
  0x2e   :  { %3106 = vmatpush3.bf16.msra.mxu1 %v3105_v3  ;;  %v3309_v3 = vld [vmem:[%s4382_s0 + $0x16c] ss:$14 sps:$4 sm:$0xff]   ;;  %v3159_v8 = vpack.c.bf16 %v253_v5, %v252_v4  ;;  %v3311_v14 = vld [vmem:[%s4382_s0 + $0x188] ss:$14 sps:$4 sm:$0xff]   ;;  %v3313_v15 = vld [vmem:[%s4382_s0 + $0x1a4] ss:$14 sps:$4 sm:$0xff]  }
  0x2f   :  { %3108 = vmatprep.subr.bf16.mxu1 %v3107_v6  ;;  %v236_v6 = vld [vmem:[#allocation3 + $0x230] sm:$0xff]  ;;  %v237_v7 = vld [vmem:[#allocation3 + $0x238] sm:$0xff]  ;;  %v1090_v11 = vcombine.high %v1067_v0, %v1081_v1  ;;  %v255_v18 = vld [vmem:[#allocation3 + $0x2c8] sm:$0xff]  ;;  %v1223_v28 = vrot.slane %v3313_v15, %v3587_v41 }
  0x30   :  { %328 = vperm.xlu1 %3280, %v279_v61   ;;  %325 = vperm.xlu0 %3279, %v278_v62   ;;  %v3157_v61 = vpack.c.bf16 %v235_v60, %v234_v58  ;;  %v947_v62 = vcombine.low %v925_v43, %v939_v44  ;;  %v3315_v19 = vld [vmem:[%s4382_s0 + $0x1c0] ss:$14 sps:$4 sm:$0xff]   ;;  %v3163_v20 = vpack.c.bf16 %v255_v18, %v254_v16  ;;  %v257_v30 = vld [vmem:[#allocation3 + $0x2d8] sm:$0xff] }
  0x31   :  { %v238_v21 = vld [vmem:[#allocation3 + $0x240] sm:$0xff]  ;;  %v239_v22 = vld [vmem:[#allocation3 + $0x248] sm:$0xff]  ;;  %v256_v29 = vld [vmem:[#allocation3 + $0x2d0] sm:$0xff]  ;;  %v1280_v33 = vrot.slane %v3315_v19, %v3587_v41 }
  0x32   :  { %3110 = vmatpush3.bf16.msra.mxu1 %v3109_v9  ;;  %v3161_v9 = vpack.c.bf16 %v237_v7, %v236_v6  ;;  %v3165_v25 = vpack.c.bf16 %v239_v22, %v238_v21  ;;  %v240_v31 = vld [vmem:[#allocation3 + $0x250] sm:$0xff]  ;;  %v241_v38 = vld [vmem:[#allocation3 + $0x258] sm:$0xff]  ;;  %v259_v45 = vld [vmem:[#allocation3 + $0x2e8] sm:$0xff] }
  0x33   :  { %3112 = vmatprep.subr.bf16.mxu1 %v3111_v13  ;;  %v1152_v13 = vrot.slane %v3309_v3, %v3587_v41  ;;  %v3169_v40 = vpack.c.bf16 %v241_v38, %v240_v31  ;;  %v1303_v44 = vcombine.high %v1280_v33, %v1294_v34  ;;  %v242_v46 = vld [vmem:[#allocation3 + $0x260] sm:$0xff]  ;;  %v243_v47 = vld [vmem:[#allocation3 + $0x268] sm:$0xff]  ;;  %v1302_v54 = vcombine.low %v1280_v33, %v1294_v34  ;;  %v260_v56 = vld [vmem:[#allocation3 + $0x2f0] sm:$0xff] }
  0x34   :  { %v3325_v51 = vld [vmem:[%s4382_s0 + $0x24c] ss:$14 sps:$4 sm:$0xff]   ;;  %v3327_v55 = vld [vmem:[%s4382_s0 + $0x268] ss:$14 sps:$4 sm:$0xff]   ;;  %v3339_v19 = vld [vmem:[%s4382_s0 + $0x310] ss:$14 sps:$4 sm:$0xff]  }
  0x35   :  { %v1160_v32 = vcombine.low %v1138_v12, %v1152_v13  ;;  %v261_v57 = vld [vmem:[#allocation3 + $0x2f8] sm:$0xff]  ;;  %v1436_v60 = vrot.slane %v3325_v51, %v3587_v41  ;;  %v1493_v4 = vrot.slane %v3327_v55, %v3587_v41  ;;  %v3331_v6 = vld [vmem:[%s4382_s0 + $0x2a0] ss:$14 sps:$4 sm:$0xff]  }
  0x36   :  { %3114 = vmatpush3.bf16.msra.mxu1 %v3113_v23  ;;  %v1089_v23 = vcombine.low %v1067_v0, %v1081_v1  ;;  %v3175_v0 = vpack.c.bf16 %v261_v57, %v260_v56  ;;  %v3333_v7 = vld [vmem:[%s4382_s0 + $0x2bc] ss:$14 sps:$4 sm:$0xff]   ;;  %v3382_v57 = vld [vmem:[%s4382_s0 + $0x104] ss:$14 sps:$4 sm:$0xff]  }
  0x37   :  { %3148 = vmatprep.subr.bf16.mxu1 %v3147_v35  ;;  %v3319_v35 = vld [vmem:[%s4382_s0 + $0x1f8] ss:$14 sps:$4 sm:$0xff]   ;;  %v3358_v38 = vld [vmem:[%s4382_s0 + $0x5c] ss:$14 sps:$4 sm:$0xff]  }
  0x38   :  { %v3347_v31 = vld [vmem:[%s4382_s0 + $0x8] ss:$14 sps:$4 sm:$0xff]   ;;  %v3374_v51 = vld [vmem:[%s4382_s0 + $0xcc] ss:$14 sps:$4 sm:$0xff]  }
  0x39   :  { %2031 = vmatmul.mubr.f32.vlgmr.msra.gmra.mrb[0].mxu1 %v734_v26  ;;  %v1161_v26 = vcombine.high %v1138_v12, %v1152_v13  ;;  %v3335_v12 = vld [vmem:[%s4382_s0 + $0x2d8] ss:$14 sps:$4 sm:$0xff]   ;;  %v3337_v13 = vld [vmem:[%s4382_s0 + $0x2f4] ss:$14 sps:$4 sm:$0xff]   ;;  %v975_v55 = vrot.slane %v3374_v51, %v3587_v41 }
  0x3a   :  { %2035 = vmatprep.mubr.f32.mxu1 %v806_v27  ;;  %3150 = vmatpush3.bf16.msra.mxu1 %v3149_v36  ;;  %v1209_v27 = vrot.slane %v3311_v14, %v3587_v41  ;;  %v3321_v36 = vld [vmem:[%s4382_s0 + $0x214] ss:$14 sps:$4 sm:$0xff]   ;;  %v1635_v16 = vrot.slane %v3335_v12, %v3587_v41  ;;  %v1649_v18 = vrot.slane %v3337_v13, %v3587_v41 }
  0x3b   :  { %3152 = vmatprep.subr.bf16.mxu1 %v3151_v48  ;;  %v1351_v48 = vrot.slane %v3319_v35, %v3587_v41  ;;  %v748_v35 = vrot.slane %v3347_v31, %v3587_v41  ;;  %v3379_v56 = vld [vmem:[%s4382_s0 + $0xe8] ss:$14 sps:$4 sm:$0xff]  }
  0x3c   :  { %v1232_v39 = vcombine.high %v1209_v27, %v1223_v28  ;;  %v1231_v43 = vcombine.low %v1209_v27, %v1223_v28  ;;  %v1658_v22 = vcombine.high %v1635_v16, %v1649_v18  ;;  %v1657_v27 = vcombine.low %v1635_v16, %v1649_v18  ;;  %v3411_v13 = vld [vmem:[%s4382_s0 + $0x1c8] ss:$14 sps:$4 sm:$0xff]  }
  0x3d   :  { %2036 = vmatmul.mubr.f32.gmra.mrb[2].mxu1 %v805_v37  ;;  %v3167_v37 = vpack.c.bf16 %v257_v30, %v256_v29 }
  0x3e   :  { %2040 = vmatprep.mubr.f32.mxu1 %v877_v42  ;;  %3154 = vmatpush3.bf16.msra.mxu1 %v3153_v49  ;;  %v258_v42 = vld [vmem:[#allocation3 + $0x2e0] sm:$0xff]  ;;  %v1365_v49 = vrot.slane %v3321_v36, %v3587_v41 }
  0x3f   :  { %3156 = vmatprep.subr.bf16.mxu1 %v3155_v59  ;;  %v3171_v52 = vpack.c.bf16 %v259_v45, %v258_v42  ;;  %v3366_v45 = vld [vmem:[%s4382_s0 + $0x94] ss:$14 sps:$4 sm:$0xff]  }
  0x40   :  { %v1374_v58 = vcombine.high %v1351_v48, %v1365_v49  ;;  %v1373_v2 = vcombine.low %v1351_v48, %v1365_v49  ;;  %v904_v49 = vrot.slane %v3366_v45, %v3587_v41 }
  0x41   :  { %2041 = vmatmul.mubr.f32.gmra.mrb[4].mxu1 %v876_v50  ;;  %v3323_v50 = vld [vmem:[%s4382_s0 + $0x230] ss:$14 sps:$4 sm:$0xff]  }
  0x42   :  { %2045 = vmatprep.mubr.f32.mxu1 %v948_v53  ;;  %3158 = vmatpush3.bf16.msra.mxu1 %v3157_v61  ;;  %v3173_v53 = vpack.c.bf16 %v243_v47, %v242_v46  ;;  %v1422_v59 = vrot.slane %v3323_v50, %v3587_v41  ;;  %v3329_v61 = vld [vmem:[%s4382_s0 + $0x284] ss:$14 sps:$4 sm:$0xff]  }
  0x43   :  { %3160 = vmatprep.subr.bf16.mxu1 %v3159_v8  ;;  %v1507_v5 = vrot.slane %v3329_v61, %v3587_v41  ;;  %v3371_v50 = vld [vmem:[%s4382_s0 + $0xb0] ss:$14 sps:$4 sm:$0xff]   ;;  %v1046_v61 = vrot.slane %v3382_v57, %v3587_v41 }
  0x44   :  { %v1445_v3 = vcombine.high %v1422_v59, %v1436_v60  ;;  %v1444_v8 = vcombine.low %v1422_v59, %v1436_v60  ;;  %v1032_v60 = vrot.slane %v3379_v56, %v3587_v41 }
  0x45   :  { %2046 = vmatmul.mubr.f32.gmra.mrb[6].mxu1 %v947_v62  ;;  %v244_v62 = vld [vmem:[#allocation3 + $0x270] sm:$0xff]  ;;  %v1515_v14 = vcombine.low %v1493_v4, %v1507_v5 }
  0x46   :  { %2050 = vmatprep.mubr.f32.mxu1 %v1019_v63  ;;  %3162 = vmatpush3.bf16.msra.mxu1 %v3161_v9  ;;  %v245_v63 = vld [vmem:[#allocation3 + $0x278] sm:$0xff]  ;;  %v1516_v9 = vcombine.high %v1493_v4, %v1507_v5  ;;  %v3398_v5 = vld [vmem:[%s4382_s0 + $0x174] ss:$14 sps:$4 sm:$0xff]  }
  0x47   :  { %3164 = vmatprep.subr.bf16.mxu1 %v3163_v20  ;;  %v3177_v1 = vpack.c.bf16 %v245_v63, %v244_v62  ;;  %v3341_v20 = vld [vmem:[%s4382_s0 + $0x32c] ss:$14 sps:$4 sm:$0xff]  }
  0x48   :  { %v1720_v24 = vrot.slane %v3341_v20, %v3587_v41  ;;  %v3387_v62 = vld [vmem:[%s4382_s0 + $0x120] ss:$14 sps:$4 sm:$0xff]   ;;  %v3390_v63 = vld [vmem:[%s4382_s0 + $0x13c] ss:$14 sps:$4 sm:$0xff]   ;;  %v3395_v4 = vld [vmem:[%s4382_s0 + $0x158] ss:$14 sps:$4 sm:$0xff]  }
  0x49   :  { %2051 = vmatmul.mubr.f32.gmra.mrb[8].mxu1 %v1018_v10  ;;  %v1564_v10 = vrot.slane %v3331_v6, %v3587_v41  ;;  %v1054_v6 = vcombine.low %v1032_v60, %v1046_v61 }
  0x4a   :  { %2055 = vmatprep.mubr.f32.mxu1 %v1090_v11  ;;  %3166 = vmatpush3.bf16.msra.mxu1 %v3165_v25  ;;  %v1578_v11 = vrot.slane %v3333_v7, %v3587_v41  ;;  %v3343_v25 = vld [vmem:[%s4382_s0 + $0x348] ss:$14 sps:$4 sm:$0xff]  }
  0x4b   :  { %3168 = vmatprep.subr.bf16.mxu1 %v3167_v37  ;;  %v1777_v29 = vrot.slane %v3343_v25, %v3587_v41  ;;  %v3355_v37 = vld [vmem:[%s4382_s0 + $0x40] ss:$14 sps:$4 sm:$0xff]   ;;  %v3422_v25 = vld [vmem:[%s4382_s0 + $0x21c] ss:$14 sps:$4 sm:$0xff]  }
  0x4c   :  { %v1587_v15 = vcombine.high %v1564_v10, %v1578_v11  ;;  %v1586_v21 = vcombine.low %v1564_v10, %v1578_v11  ;;  %v819_v42 = vrot.slane %v3355_v37, %v3587_v41  ;;  %v3403_v10 = vld [vmem:[%s4382_s0 + $0x190] ss:$14 sps:$4 sm:$0xff]   ;;  %v3406_v11 = vld [vmem:[%s4382_s0 + $0x1ac] ss:$14 sps:$4 sm:$0xff]  }
  0x4d   :  { %2056 = vmatmul.mubr.f32.gmra.mrb[10].mxu1 %v1089_v23  ;;  %v1706_v23 = vrot.slane %v3339_v19, %v3587_v41  ;;  %v1245_v16 = vrot.slane %v3403_v10, %v3587_v41  ;;  %v1259_v18 = vrot.slane %v3406_v11, %v3587_v41  ;;  %v3820_v19 = vand.u32 127, %v280_v17 }
  0x4e   :  { %2060 = vmatprep.mubr.f32.mxu1 %v1161_v26  ;;  %3170 = vmatpush3.bf16.msra.mxu1 %v3169_v40  ;;  %v3345_v26 = vld [vmem:[%s4382_s0 + $0x364] ss:$14 sps:$4 sm:$0xff]  }
  0x4f   :  { %3172 = vmatprep.subr.bf16.mxu1 %v3171_v52  ;;  %v1729_v28 = vcombine.high %v1706_v23, %v1720_v24  ;;  %v1791_v30 = vrot.slane %v3345_v26, %v3587_v41  ;;  %v1728_v33 = vcombine.low %v1706_v23, %v1720_v24  ;;  %v1268_v23 = vcombine.high %v1245_v16, %v1259_v18  ;;  %v3419_v24 = vld [vmem:[%s4382_s0 + $0x200] ss:$14 sps:$4 sm:$0xff]  }
  0x50   :  { %v198_v26 = vld [vmem:[#allocation3 + $0x100] sm:$0xff]  ;;  %v1267_v31 = vcombine.low %v1245_v16, %v1259_v18  ;;  %v1387_v37 = vrot.slane %v3419_v24, %v3587_v41  ;;  %v223_v16 = vld [vmem:[#allocation3 + $0x1c8] sm:$0xff] }
  0x51   :  { %2061 = vmatmul.mubr.f32.gmra.mrb[12].mxu1 %v1160_v32  ;;  %v3350_v32 = vld [vmem:[%s4382_s0 + $0x24] ss:$14 sps:$4 sm:$0xff]   ;;  %v1800_v34 = vcombine.high %v1777_v29, %v1791_v30  ;;  %v3451_v24 = vld [vmem:[%s4382_s0 + $0x2e0] ss:$14 sps:$4 sm:$0xff]  }
  0x52   :  { %2065 = vmatprep.mubr.f32.mxu1 %v1232_v39  ;;  %3174 = vmatpush3.bf16.msra.mxu1 %v3173_v53  ;;  %v762_v36 = vrot.slane %v3350_v32, %v3587_v41  ;;  %v1799_v39 = vcombine.low %v1777_v29, %v1791_v30  ;;  %v216_v29 = vld [vmem:[#allocation3 + $0x190] sm:$0xff]  ;;  %v217_v30 = vld [vmem:[#allocation3 + $0x198] sm:$0xff] }
  0x53   :  { %3176 = vmatprep.subr.bf16.mxu1 %v3175_v0 }
  0x54   :  { %v771_v40 = vcombine.high %v748_v35, %v762_v36  ;;  %v770_v46 = vcombine.low %v748_v35, %v762_v36  ;;  %v3506_v35 = vmov 0.0  }
  0x55   :  { %2066 = vmatmul.mubr.f32.gmra.mrb[14].mxu1 %v1231_v43  ;;  %v833_v43 = vrot.slane %v3358_v38, %v3587_v41  ;;  %v1401_v38 = vrot.slane %v3422_v25, %v3587_v41  ;;  %v3454_v25 = vld [vmem:[%s4382_s0 + $0x2fc] ss:$14 sps:$4 sm:$0xff]  }
  0x56   :  { %2070 = vmatprep.mubr.f32.mxu1 %v1303_v44  ;;  %3178 = vmatpush3.bf16.msra.mxu1 %v3177_v1  ;;  %v3363_v44 = vld [vmem:[%s4382_s0 + $0x78] ss:$14 sps:$4 sm:$0xff]   ;;  %v1055_v1 = vcombine.high %v1032_v60, %v1046_v61 }
  0x57   :  { %v842_v47 = vcombine.high %v819_v42, %v833_v43  ;;  %v890_v48 = vrot.slane %v3363_v44, %v3587_v41  ;;  %v841_v52 = vcombine.low %v819_v42, %v833_v43  ;;  %v3119_v44 = vpack.c.bf16 %v217_v30, %v216_v29  ;;  %v202_v60 = vld [vmem:[#allocation3 + $0x120] sm:$0xff]  ;;  %v203_v61 = vld [vmem:[#allocation3 + $0x128] sm:$0xff] }
  0x58   :  { %v3125_v10 = vpack.c.bf16 %v203_v61, %v202_v60  ;;  %v206_v29 = vld [vmem:[#allocation3 + $0x140] sm:$0xff]  ;;  %v207_v30 = vld [vmem:[#allocation3 + $0x148] sm:$0xff] }
  0x59   :  { %2071 = vmatmul.mubr.f32.gmra.mrb[16].mxu1 %v1302_v54  ;;  %v913_v53 = vcombine.high %v890_v48, %v904_v49  ;;  %v961_v54 = vrot.slane %v3371_v50, %v3587_v41  ;;  %v3286_v60 = vld [vmem:[%s4382_s0 + $0x20] ss:$14 sps:$4 sm:$0xff]  }
  0x5a   :  { %2075 = vmatprep.mubr.f32.mxu1 %v1374_v58  ;;  %v912_v58 = vcombine.low %v890_v48, %v904_v49  ;;  %v218_v48 = vld [vmem:[#allocation3 + $0x1a0] sm:$0xff]  ;;  %v219_v49 = vld [vmem:[#allocation3 + $0x1a8] sm:$0xff] }
  0x5b   :  { %v984_v59 = vcombine.high %v961_v54, %v975_v55  ;;  %v983_v0 = vcombine.low %v961_v54, %v975_v55  ;;  %v3435_v54 = vld [vmem:[%s4382_s0 + $0x270] ss:$14 sps:$4 sm:$0xff]   ;;  %v3438_v55 = vld [vmem:[%s4382_s0 + $0x28c] ss:$14 sps:$4 sm:$0xff]  }
  0x5d   :  { %2076 = vmatmul.mubr.f32.gmra.mrb[18].mxu1 %v1373_v2  ;;  %v1103_v2 = vrot.slane %v3387_v62, %v3587_v41  ;;  %v220_v62 = vld [vmem:[#allocation3 + $0x1b0] sm:$0xff] }
  0x5e   :  { %2080 = vmatprep.mubr.f32.mxu1 %v1445_v3  ;;  %v1117_v3 = vrot.slane %v3390_v63, %v3587_v41  ;;  %v221_v63 = vld [vmem:[#allocation3 + $0x1b8] sm:$0xff] }
  0x5f   :  { %v3127_v11 = vpack.c.bf16 %v221_v63, %v220_v62 }
  0x60   :  { %v1126_v7 = vcombine.high %v1103_v2, %v1117_v3  ;;  %v1125_v12 = vcombine.low %v1103_v2, %v1117_v3  ;;  %v3443_v2 = vld [vmem:[%s4382_s0 + $0x2a8] ss:$14 sps:$4 sm:$0xff]   ;;  %v3446_v3 = vld [vmem:[%s4382_s0 + $0x2c4] ss:$14 sps:$4 sm:$0xff]  }
  0x61   :  { %2081 = vmatmul.mubr.f32.gmra.mrb[20].mxu1 %v1444_v8  ;;  %v1174_v8 = vrot.slane %v3395_v4, %v3587_v41  ;;  %v3886_v18 = vrot.slane %v3443_v2, %v3587_v41  ;;  %v211_v2 = vld [vmem:[#allocation3 + $0x168] sm:$0xff] }
  0x62   :  { %2085 = vmatprep.mubr.f32.mxu1 %v1516_v9  ;;  %v1188_v9 = vrot.slane %v3398_v5, %v3587_v41 }
  0x64   :  { %v1196_v20 = vcombine.low %v1174_v8, %v1188_v9 }
  0x65   :  { %2086 = vmatmul.mubr.f32.gmra.mrb[22].mxu1 %v1515_v14  ;;  %v3414_v14 = vld [vmem:[%s4382_s0 + $0x1e4] ss:$14 sps:$4 sm:$0xff]  }
  0x66   :  { %2090 = vmatprep.mubr.f32.mxu1 %v1587_v15  ;;  %v1197_v15 = vcombine.high %v1174_v8, %v1188_v9 }
  0x69   :  { %2091 = vmatmul.mubr.f32.gmra.mrb[24].mxu1 %v1586_v21  ;;  %v1316_v21 = vrot.slane %v3411_v13, %v3587_v41 }
  0x6a   :  { %2095 = vmatprep.mubr.f32.mxu1 %v1658_v22  ;;  %v1330_v22 = vrot.slane %v3414_v14, %v3587_v41  ;;  %v205_v14 = vld [vmem:[#allocation3 + $0x138] sm:$0xff] }
  0x6c   :  { %v1339_v32 = vcombine.high %v1316_v21, %v1330_v22  ;;  %v1338_v45 = vcombine.low %v1316_v21, %v1330_v22 }
  0x6d   :  { %2096 = vmatmul.mubr.f32.gmra.mrb[26].mxu1 %v1657_v27  ;;  %v199_v27 = vld [vmem:[#allocation3 + $0x108] sm:$0xff] }
  0x6e   :  { %2100 = vmatprep.mubr.f32.mxu1 %v1729_v28  ;;  %v3117_v43 = vpack.c.bf16 %v199_v27, %v198_v26 }
  0x71   :  { %2101 = vmatmul.mubr.f32.gmra.mrb[28].mxu1 %v1728_v33  ;;  %v3427_v33 = vld [vmem:[%s4382_s0 + $0x238] ss:$14 sps:$4 sm:$0xff]  }
  0x72   :  { %2105 = vmatprep.mubr.f32.mxu1 %v1800_v34  ;;  %v3430_v34 = vld [vmem:[%s4382_s0 + $0x254] ss:$14 sps:$4 sm:$0xff]   ;;  %v3845_v50 = vrot.slane %v3427_v33, %v3587_v41 }
  0x73   :  { %v3848_v51 = vrot.slane %v3430_v34, %v3587_v41 }
  0x75   :  { %2106 = vmatmul.mubr.f32.gmra.mrb[30].mxu1 %v1799_v39  ;;  %v200_v39 = vld [vmem:[#allocation3 + $0x110] sm:$0xff]  ;;  %v1480_v13 = vcombine.low %v3845_v50, %v3848_v51 }
  0x76   :  { %2320 = vmatprep.mubr.f32.mxu1 %v771_v40 }
  0x79   :  { %2321 = vmatmul.mubr.f32.vlgmr.msra.gmra.mrb[32].mxu1 %v770_v46 }
  0x7a   :  { %2325 = vmatprep.mubr.f32.mxu1 %v842_v47  ;;  %v201_v47 = vld [vmem:[#allocation3 + $0x118] sm:$0xff] }
  0x7d   :  { %2326 = vmatmul.mubr.f32.gmra.mrb[34].mxu1 %v841_v52 }
  0x7e   :  { %2330 = vmatprep.mubr.f32.mxu1 %v913_v53  ;;  %v1410_v53 = vcombine.high %v1387_v37, %v1401_v38 }
  0x81   :  { %2331 = vmatmul.mubr.f32.gmra.mrb[36].mxu1 %v912_v58  ;;  %v3121_v58 = vpack.c.bf16 %v201_v47, %v200_v39  ;;  %v208_v47 = vld [vmem:[#allocation3 + $0x150] sm:$0xff] }
  0x82   :  { %2335 = vmatprep.mubr.f32.mxu1 %v984_v59  ;;  %v3123_v59 = vpack.c.bf16 %v219_v49, %v218_v48  ;;  %v209_v49 = vld [vmem:[#allocation3 + $0x158] sm:$0xff] }
  0x83   :  { %v3137_v63 = vpack.c.bf16 %v209_v49, %v208_v47  ;;  %v3378_v49 = vld [vmem:[%s4382_s0 + $0x100] ss:$14 sps:$4 sm:$0xff]  }
  0x85   :  { %2336 = vmatmul.mubr.f32.gmra.mrb[38].mxu1 %v983_v0  ;;  %v1409_v0 = vcombine.low %v1387_v37, %v1401_v38  ;;  %v3462_v37 = vld [vmem:[%s4382_s0 + $0x334] ss:$14 sps:$4 sm:$0xff]  }
  0x86   :  { %2340 = vmatprep.mubr.f32.mxu1 %v1055_v1  ;;  %v1481_v1 = vcombine.high %v3845_v50, %v3848_v51  ;;  %v226_v50 = vld [vmem:[#allocation3 + $0x1e0] sm:$0xff]  ;;  %v227_v51 = vld [vmem:[#allocation3 + $0x1e8] sm:$0xff] }
  0x89   :  { %2341 = vmatmul.mubr.f32.gmra.mrb[40].mxu1 %v1054_v6  ;;  %v3874_v6 = vrot.slane %v3435_v54, %v3587_v41 }
  0x8a   :  { %2345 = vmatprep.mubr.f32.mxu1 %v1126_v7  ;;  %v3877_v7 = vrot.slane %v3438_v55, %v3587_v41 }
  0x8c   :  { %v1551_v33 = vcombine.low %v3874_v6, %v3877_v7 }
  0x8d   :  { %2346 = vmatmul.mubr.f32.gmra.mrb[42].mxu1 %v1125_v12  ;;  %v204_v12 = vld [vmem:[#allocation3 + $0x130] sm:$0xff] }
  0x8e   :  { %2350 = vmatprep.mubr.f32.mxu1 %v1197_v15  ;;  %v222_v15 = vld [vmem:[#allocation3 + $0x1c0] sm:$0xff] }
  0x91   :  { %2351 = vmatmul.mubr.f32.gmra.mrb[44].mxu1 %v1196_v20  ;;  %v3889_v20 = vrot.slane %v3446_v3, %v3587_v41 }
  0x92   :  { %2355 = vmatprep.mubr.f32.mxu1 %v1268_v23  ;;  %v1552_v23 = vcombine.high %v3874_v6, %v3877_v7  ;;  %v228_v7 = vld [vmem:[#allocation3 + $0x1f0] sm:$0xff] }
  0x93   :  { %v290_v17 = vpop.permute.xlu1 %289  ;;  %v284_v28 = vpop.permute.xlu0 %283  ;;  %v1623_v34 = vcombine.high %v3886_v18, %v3889_v20  ;;  %v1622_v48 = vcombine.low %v3886_v18, %v3889_v20  ;;  %v3354_v18 = vld [vmem:[%s4382_s0 + $0x58] ss:$14 sps:$4 sm:$0xff]  }
  0x94   :  { %vm330_vm1 = vcmp.eq.s32.totalorder %v3820_v19, %v284_v28  ;;  %vm332_vm2 = vcmp.eq.s32.totalorder %v3820_v19, %v290_v17  ;;  %v3129_v17 = vpack.c.bf16 %v205_v14, %v204_v12  ;;  %v3131_v28 = vpack.c.bf16 %v223_v16, %v222_v15  ;;  %v3353_v16 = vld [vmem:[%s4382_s0 + $0x3c] ss:$14 sps:$4 sm:$0xff]  }
  0x95   :  { %v2647_v36 = vsel %vm330_vm1, 1.0, %v3506_v35  ;;  %v2649_v46 = vsel %vm332_vm2, 1.0, %v3506_v35  ;;  %2356 = vmatmul.mubr.f32.gmra.mrb[46].mxu1 %v1267_v31  ;;  %v224_v31 = vld [vmem:[#allocation3 + $0x1d0] sm:$0xff]  ;;  %v733_v12 = vrot.slane %v3286_v60, %v3587_v41 }
  0x96   :  { %2992 = vmatprep.mubr.msk.f32.mxu0 %vm380_vm0, %v2647_v36  ;;  %2360 = vmatprep.mubr.f32.mxu1 %v1339_v32  ;;  %v225_v32 = vld [vmem:[#allocation3 + $0x1d8] sm:$0xff]  ;;  %v3393_v60 = vld [vmem:[%s4382_s0 + $0x154] ss:$14 sps:$4 sm:$0xff]  }
  0x97   :  { %v293_v40 = vpop.permute.xlu1 %292  ;;  %v287_v42 = vpop.permute.xlu0 %286  ;;  %v3459_v36 = vld [vmem:[%s4382_s0 + $0x318] ss:$14 sps:$4 sm:$0xff]  }
  0x98   :  { %vm331_vm3 = vcmp.eq.s32.totalorder %v3820_v19, %v287_v42  ;;  %vm333_vm4 = vcmp.eq.s32.totalorder %v3820_v19, %v293_v40  ;;  %v3922_v40 = vrot.slane %v3451_v24, %v3587_v41  ;;  %v3925_v42 = vrot.slane %v3454_v25, %v3587_v41 }
  0x99   :  { %v2648_v52 = vsel %vm331_vm3, 1.0, %v3506_v35  ;;  %2361 = vmatmul.mubr.f32.gmra.mrb[48].mxu1 %v1338_v45  ;;  %v2650_v4 = vsel %vm333_vm4, 1.0, %v3506_v35  ;;  %v3133_v45 = vpack.c.bf16 %v207_v30, %v206_v29  ;;  %v790_v30 = vrot.slane %v3353_v16, %v3587_v41 }
  0x9a   :  { %2993 = vmatmul.mubr.msk.f32.vlgmr.msra.gmra.mrb[0].mxu0 %vm380_vm0, %v2648_v52  ;;  %2365 = vmatprep.mubr.f32.mxu1 %v1410_v53  ;;  %v3934_v52 = vrot.slane %v3459_v36, %v3587_v41  ;;  %v3937_v53 = vrot.slane %v3462_v37, %v3587_v41  ;;  %v1693_v3 = vcombine.low %v3922_v40, %v3925_v42 }
  0x9b   :  { %v299_v56 = vpop.permute.xlu1 %298  ;;  %2995 = vmatprep.mubr.msk.f32.mxu0 %vm380_vm0, %v2649_v46  ;;  %v296_v57 = vpop.permute.xlu0 %295  ;;  %3118 = vmatpush3.bf16.msra.mxu0 %v3117_v43  ;;  %v3135_v46 = vpack.c.bf16 %v225_v32, %v224_v31  ;;  %v804_v31 = vrot.slane %v3354_v18, %v3587_v41  ;;  %v3361_v32 = vld [vmem:[%s4382_s0 + $0x74] ss:$14 sps:$4 sm:$0xff]  }
  0x9c   :  { %vm334_vm5 = vcmp.eq.s32.totalorder %v3820_v19, %v296_v57  ;;  %3120 = vmatprep.subr.bf16.mxu0 %v3119_v44  ;;  %vm335_vm6 = vcmp.eq.s32.totalorder %v3820_v19, %v299_v56  ;;  %v1694_v56 = vcombine.high %v3922_v40, %v3925_v42  ;;  %v3467_v57 = vld [vmem:[%s4382_s0 + $0x350] ss:$14 sps:$4 sm:$0xff]   ;;  %v3369_v42 = vld [vmem:[%s4382_s0 + $0xac] ss:$14 sps:$4 sm:$0xff]  }
  0x9d   :  { %v2651_v5 = vsel %vm334_vm5, 1.0, %v3506_v35  ;;  %2366 = vmatmul.mubr.f32.gmra.mrb[50].mxu1 %v1409_v0  ;;  %v2652_v21 = vsel %vm335_vm6, 1.0, %v3506_v35  ;;  %v3139_v0 = vpack.c.bf16 %v227_v51, %v226_v50 }
  0x9e   :  { %2996 = vmatmul.mubr.msk.f32.gmra.mrb[2].mxu0 %vm380_vm0, %v2650_v4  ;;  %2370 = vmatprep.mubr.f32.mxu1 %v1481_v1  ;;  %v210_v1 = vld [vmem:[#allocation3 + $0x160] sm:$0xff]  ;;  %v1765_v4 = vcombine.high %v3934_v52, %v3937_v53 }
  0x9f   :  { %v305_v8 = vpop.permute.xlu1 %304  ;;  %2998 = vmatprep.mubr.msk.f32.mxu0 %vm380_vm0, %v2651_v5  ;;  %v302_v9 = vpop.permute.xlu0 %301  ;;  %3122 = vmatpush3.bf16.msra.mxu0 %v3121_v58  ;;  %v3470_v58 = vld [vmem:[%s4382_s0 + $0x36c] ss:$14 sps:$4 sm:$0xff]   ;;  %v3141_v15 = vpack.c.bf16 %v211_v2, %v210_v1 }
  0xa0   :  { %vm336_vm7 = vcmp.eq.s32.totalorder %v3820_v19, %v302_v9  ;;  %3124 = vmatprep.subr.bf16.mxu0 %v3123_v59  ;;  %vm337_vm8 = vcmp.eq.s32.totalorder %v3820_v19, %v305_v8  ;;  %v3283_v59 = vld [vmem:[%s4382_s0 + $0x4] ss:$14 sps:$4 sm:$0xff]   ;;  %v229_v8 = vld [vmem:[#allocation3 + $0x1f8] sm:$0xff]  ;;  %v1813_v9 = vrot.slane %v3467_v57, %v3587_v41 }
  0xa1   :  { %v2653_v22 = vsel %vm336_vm7, 1.0, %v3506_v35  ;;  %2371 = vmatmul.mubr.f32.gmra.mrb[52].mxu1 %v1480_v13  ;;  %v2654_v38 = vsel %vm337_vm8, 1.0, %v3506_v35  ;;  %v3143_v20 = vpack.c.bf16 %v229_v8, %v228_v7  ;;  %v3401_v2 = vld [vmem:[%s4382_s0 + $0x18c] ss:$14 sps:$4 sm:$0xff]   ;;  %v3409_v8 = vld [vmem:[%s4382_s0 + $0x1c4] ss:$14 sps:$4 sm:$0xff]  }
  0xa2   :  { %2999 = vmatmul.mubr.msk.f32.gmra.mrb[4].mxu0 %vm380_vm0, %v2652_v21  ;;  %2375 = vmatprep.mubr.f32.mxu1 %v1552_v23  ;;  %v212_v21 = vld [vmem:[#allocation3 + $0x170] sm:$0xff]  ;;  %v1764_v23 = vcombine.low %v3934_v52, %v3937_v53  ;;  %v1017_v53 = vrot.slane %v3378_v49, %v3587_v41 }
  0xa3   :  { %v311_v26 = vpop.permute.xlu1 %310  ;;  %3001 = vmatprep.mubr.msk.f32.mxu0 %vm380_vm0, %v2653_v22  ;;  %v308_v27 = vpop.permute.xlu0 %307  ;;  %3126 = vmatpush3.bf16.msra.mxu0 %v3125_v10  ;;  %v1827_v10 = vrot.slane %v3470_v58, %v3587_v41  ;;  %v213_v22 = vld [vmem:[#allocation3 + $0x178] sm:$0xff] }
  0xa4   :  { %vm338_vm9 = vcmp.eq.s32.totalorder %v3820_v19, %v308_v27  ;;  %3128 = vmatprep.subr.bf16.mxu0 %v3127_v11  ;;  %vm339_vm10 = vcmp.eq.s32.totalorder %v3820_v19, %v311_v26  ;;  %v719_v11 = vrot.slane %v3283_v59, %v3587_v41  ;;  %v262_v26 = vld [vmem:[#allocation3 + $0x300] sm:$0xff]  ;;  %v263_v27 = vld [vmem:[#allocation3 + $0x308] sm:$0xff]  ;;  %v3145_v29 = vpack.c.bf16 %v213_v22, %v212_v21 }
  0xa5   :  { %v2655_v39 = vsel %vm338_vm9, 1.0, %v3506_v35  ;;  %2376 = vmatmul.mubr.f32.gmra.mrb[54].mxu1 %v1551_v33  ;;  %v2656_v54 = vsel %vm339_vm10, 1.0, %v3506_v35  ;;  %v3362_v33 = vld [vmem:[%s4382_s0 + $0x90] ss:$14 sps:$4 sm:$0xff]   ;;  %v3425_v22 = vld [vmem:[%s4382_s0 + $0x234] ss:$14 sps:$4 sm:$0xff]  }
  0xa6   :  { %3002 = vmatmul.mubr.msk.f32.gmra.mrb[6].mxu0 %vm380_vm0, %v2654_v38  ;;  %2380 = vmatprep.mubr.f32.mxu1 %v1623_v34  ;;  %v1835_v34 = vcombine.low %v1813_v9, %v1827_v10  ;;  %v736_v37 = vcombine.low %v719_v11, %v733_v12  ;;  %v808_v38 = vcombine.high %v790_v30, %v804_v31 }
  0xa7   :  { %v317_v43 = vpop.permute.xlu1 %316  ;;  %3004 = vmatprep.mubr.msk.f32.mxu0 %vm380_vm0, %v2655_v39  ;;  %v314_v44 = vpop.permute.xlu0 %313  ;;  %3130 = vmatpush3.bf16.msra.mxu0 %v3129_v17  ;;  %v1836_v17 = vcombine.high %v1813_v9, %v1827_v10  ;;  %v861_v39 = vrot.slane %v3361_v32, %v3587_v41  ;;  %v875_v40 = vrot.slane %v3362_v33, %v3587_v41  ;;  %v3410_v9 = vld [vmem:[%s4382_s0 + $0x1e0] ss:$14 sps:$4 sm:$0xff]   ;;  %v3441_v33 = vld [vmem:[%s4382_s0 + $0x2a4] ss:$14 sps:$4 sm:$0xff]  }
  0xa8   :  { %vm340_vm11 = vcmp.eq.s32.totalorder %v3820_v19, %v314_v44  ;;  %3132 = vmatprep.subr.bf16.mxu0 %v3131_v28  ;;  %vm341_vm12 = vcmp.eq.s32.totalorder %v3820_v19, %v317_v43  ;;  %v737_v28 = vcombine.high %v719_v11, %v733_v12  ;;  %v3370_v43 = vld [vmem:[%s4382_s0 + $0xc8] ss:$14 sps:$4 sm:$0xff]   ;;  %v807_v44 = vcombine.low %v790_v30, %v804_v31 }
  0xa9   :  { %v2657_v55 = vsel %vm340_vm11, 1.0, %v3506_v35  ;;  %2381 = vmatmul.mubr.f32.gmra.mrb[56].mxu1 %v1622_v48  ;;  %v2658_v5 = vsel %vm341_vm12, 1.0, %v3506_v35  ;;  %v946_v47 = vrot.slane %v3370_v43, %v3587_v41  ;;  %v3377_v48 = vld [vmem:[%s4382_s0 + $0xe4] ss:$14 sps:$4 sm:$0xff]   ;;  %v878_v50 = vcombine.low %v861_v39, %v875_v40 }
  0xaa   :  { %3005 = vmatmul.mubr.msk.f32.gmra.mrb[8].mxu0 %vm380_vm0, %v2656_v54  ;;  %2385 = vmatprep.mubr.f32.mxu1 %v1694_v56  ;;  %v1003_v52 = vrot.slane %v3377_v48, %v3587_v41  ;;  %v3385_v54 = vld [vmem:[%s4382_s0 + $0x11c] ss:$14 sps:$4 sm:$0xff]   ;;  %v1287_v12 = vrot.slane %v3409_v8, %v3587_v41 }
  0xab   :  { %v323_v61 = vpop.permute.xlu1 %322  ;;  %3007 = vmatprep.mubr.msk.f32.mxu0 %vm380_vm0, %v2657_v55  ;;  %v320_v62 = vpop.permute.xlu0 %319  ;;  %3134 = vmatpush3.bf16.msra.mxu0 %v3133_v45  ;;  %v879_v45 = vcombine.high %v861_v39, %v875_v40  ;;  %v3386_v55 = vld [vmem:[%s4382_s0 + $0x138] ss:$14 sps:$4 sm:$0xff]   ;;  %v1074_v58 = vrot.slane %v3385_v54, %v3587_v41  ;;  %v3449_v39 = vld [vmem:[%s4382_s0 + $0x2dc] ss:$14 sps:$4 sm:$0xff]  }
  0xac   :  { %vm342_vm13 = vcmp.eq.s32.totalorder %v3820_v19, %v320_v62  ;;  %3136 = vmatprep.subr.bf16.mxu0 %v3135_v46  ;;  %vm343_vm14 = vcmp.eq.s32.totalorder %v3820_v19, %v323_v61  ;;  %v932_v46 = vrot.slane %v3369_v42, %v3587_v41  ;;  %v1021_v57 = vcombine.high %v1003_v52, %v1017_v53  ;;  %v3394_v61 = vld [vmem:[%s4382_s0 + $0x170] ss:$14 sps:$4 sm:$0xff]   ;;  %v3450_v40 = vld [vmem:[%s4382_s0 + $0x2f8] ss:$14 sps:$4 sm:$0xff]  }
  0xad   :  { %v2659_v6 = vsel %vm342_vm13, 1.0, %v3506_v35  ;;  %2386 = vmatmul.mubr.f32.gmra.mrb[58].mxu1 %v1693_v3  ;;  %v2660_v24 = vsel %vm343_vm14, 1.0, %v3506_v35  ;;  %v1088_v59 = vrot.slane %v3386_v55, %v3587_v41  ;;  %v1020_v62 = vcombine.low %v1003_v52, %v1017_v53  ;;  %v3402_v3 = vld [vmem:[%s4382_s0 + $0x1a8] ss:$14 sps:$4 sm:$0xff]   ;;  %v3465_v52 = vld [vmem:[%s4382_s0 + $0x34c] ss:$14 sps:$4 sm:$0xff]  }
  0xae   :  { %3008 = vmatmul.mubr.msk.f32.gmra.mrb[10].mxu0 %vm380_vm0, %v2658_v5  ;;  %2390 = vmatprep.mubr.f32.mxu1 %v1765_v4  ;;  %v950_v51 = vcombine.high %v932_v46, %v946_v47  ;;  %v949_v56 = vcombine.low %v932_v46, %v946_v47  ;;  %v1159_v1 = vrot.slane %v3394_v61, %v3587_v41  ;;  %v3457_v46 = vld [vmem:[%s4382_s0 + $0x314] ss:$14 sps:$4 sm:$0xff]   ;;  %v3458_v47 = vld [vmem:[%s4382_s0 + $0x330] ss:$14 sps:$4 sm:$0xff]  }
  0xaf   :  { %v329_v13 = vpop.permute.xlu1 %328  ;;  %3010 = vmatprep.mubr.msk.f32.mxu0 %vm380_vm0, %v2659_v6  ;;  %v326_v14 = vpop.permute.xlu0 %325  ;;  %3138 = vmatpush3.bf16.msra.mxu0 %v3137_v63  ;;  %v1092_v63 = vcombine.high %v1074_v58, %v1088_v59  ;;  %v1091_v4 = vcombine.low %v1074_v58, %v1088_v59  ;;  %v1216_v6 = vrot.slane %v3401_v2, %v3587_v41  ;;  %v3466_v53 = vld [vmem:[%s4382_s0 + $0x368] ss:$14 sps:$4 sm:$0xff]   ;;  %v3349_v55 = vld [vmem:[%s4382_s0 + $0xc] ss:$14 sps:$4 sm:$0x33]  }
  0xb0   :  { %vm344_vm15 = vcmp.eq.s32.totalorder %v3820_v19, %v326_v14  ;;  %3140 = vmatprep.subr.bf16.mxu0 %v3139_v0  ;;  %vm345_vm1 = vcmp.eq.s32.totalorder %v3820_v19, %v329_v13  ;;  %v3179_v19 = vpack.c.bf16 %v263_v27, %v262_v26  ;;  %v1145_v0 = vrot.slane %v3393_v60, %v3587_v41  ;;  %v3417_v14 = vld [vmem:[%s4382_s0 + $0x1fc] ss:$14 sps:$4 sm:$0xff]   ;;  %v3357_v60 = vld [vmem:[%s4382_s0 + $0x44] ss:$14 sps:$4 sm:$0x33]  }
  0xb1   :  { %v2661_v25 = vsel %vm344_vm15, 1.0, %v3506_v35  ;;  %2391 = vmatmul.mubr.f32.gmra.mrb[60].mxu1 %v1764_v23  ;;  %v2662_v36 = vsel %vm345_vm1, 1.0, %v3506_v35  ;;  %v1230_v7 = vrot.slane %v3402_v3, %v3587_v41  ;;  %v1301_v13 = vrot.slane %v3410_v9, %v3587_v41  ;;  %v3426_v23 = vld [vmem:[%s4382_s0 + $0x250] ss:$14 sps:$4 sm:$0xff]  }
  0xb2   :  { %3011 = vmatmul.mubr.msk.f32.gmra.mrb[12].mxu0 %vm380_vm0, %v2660_v24  ;;  %2395 = vmatprep.mubr.f32.mxu1 %v1836_v17  ;;  %v1163_v5 = vcombine.high %v1145_v0, %v1159_v1  ;;  %v1162_v10 = vcombine.low %v1145_v0, %v1159_v1  ;;  %v1429_v26 = vrot.slane %v3425_v22, %v3587_v41  ;;  %v3433_v17 = vld [vmem:[%s4382_s0 + $0x26c] ss:$14 sps:$4 sm:$0xff]   ;;  %v3368_v0 = vld [vmem:[%s4382_s0 + $0x98] ss:$14 sps:$4 sm:$0x33]  }
  0xb3   :  { %3013 = vmatprep.mubr.msk.f32.mxu0 %vm380_vm0, %v2661_v25  ;;  %3142 = vmatpush3.bf16.msra.mxu0 %v3141_v15  ;;  %v1234_v11 = vcombine.high %v1216_v6, %v1230_v7  ;;  %v3418_v15 = vld [vmem:[%s4382_s0 + $0x218] ss:$14 sps:$4 sm:$0xff]   ;;  %v1233_v16 = vcombine.low %v1216_v6, %v1230_v7  ;;  %v1305_v18 = vcombine.high %v1287_v12, %v1301_v13  ;;  %v3360_v61 = vld [vmem:[%s4382_s0 + $0x60] ss:$14 sps:$4 sm:$0x33]  }
  0xb4   :  { %3144 = vmatprep.subr.bf16.mxu0 %v3143_v20  ;;  %v1358_v20 = vrot.slane %v3417_v14, %v3587_v41  ;;  %v1372_v21 = vrot.slane %v3418_v15, %v3587_v41  ;;  %v1304_v24 = vcombine.low %v1287_v12, %v1301_v13  ;;  %v1443_v27 = vrot.slane %v3426_v23, %v3587_v41  ;;  %v3373_v6 = vld [vmem:[%s4382_s0 + $0xb4] ss:$14 sps:$4 sm:$0x33]   ;;  %v3376_v7 = vld [vmem:[%s4382_s0 + $0xd0] ss:$14 sps:$4 sm:$0x33]  }
  0xb5   :  { %2396 = vmatmul.mubr.f32.gmra.mrb[62].mxu1 %v1835_v34  ;;  %v1500_v31 = vrot.slane %v3433_v17, %v3587_v41  ;;  %v1784_v58 = vrot.slane %v3465_v52, %v3587_v41  ;;  %v1798_v59 = vrot.slane %v3466_v53, %v3587_v41  ;;  %v755_v2 = vrot.slane %v3349_v55, %v3587_v41  ;;  %v3381_v9 = vld [vmem:[%s4382_s0 + $0xec] ss:$14 sps:$4 sm:$0x33]   ;;  %v3389_v15 = vld [vmem:[%s4382_s0 + $0x124] ss:$14 sps:$4 sm:$0x33]  }
  0xb6   :  { %3014 = vmatmul.mubr.msk.f32.gmra.mrb[14].mxu0 %vm380_vm0, %v2662_v36  ;;  %v1376_v25 = vcombine.high %v1358_v20, %v1372_v21  ;;  %v1447_v30 = vcombine.high %v1429_v26, %v1443_v27  ;;  %v1446_v34 = vcombine.low %v1429_v26, %v1443_v27  ;;  %v911_v13 = vrot.slane %v3368_v0, %v3587_v41  ;;  %v3400_v22 = vld [vmem:[%s4382_s0 + $0x178] ss:$14 sps:$4 sm:$0x33]   ;;  %v3405_v26 = vld [vmem:[%s4382_s0 + $0x194] ss:$14 sps:$4 sm:$0x33]  }
  0xb7   :  { %3146 = vmatpush3.bf16.msra.mxu0 %v3145_v29  ;;  %2175 = vmatprep.mubr.f32.mxu0 %v737_v28  ;;  %v3434_v28 = vld [vmem:[%s4382_s0 + $0x288] ss:$14 sps:$4 sm:$0xff]   ;;  %v1375_v29 = vcombine.low %v1358_v20, %v1372_v21  ;;  %v1802_v1 = vcombine.high %v1784_v58, %v1798_v59  ;;  %v1801_v8 = vcombine.low %v1784_v58, %v1798_v59  ;;  %v3408_v27 = vld [vmem:[%s4382_s0 + $0x1b0] ss:$14 sps:$4 sm:$0x33]  }
  0xb8   :  { %3180 = vmatprep.subr.bf16.mxu0 %v3179_v19  ;;  %v1514_v32 = vrot.slane %v3434_v28, %v3587_v41  ;;  %v982_v20 = vrot.slane %v3376_v7, %v3587_v41  ;;  %v3397_v21 = vld [vmem:[%s4382_s0 + $0x15c] ss:$14 sps:$4 sm:$0x33]   ;;  %v1110_v28 = vrot.slane %v3389_v15, %v3587_v41  ;;  %v3448_v52 = vld [vmem:[%s4382_s0 + $0x2c8] ss:$14 sps:$4 sm:$0x33]  }
  0xba   :  { %2176 = vmatmul.mubr.f32.vlgmr.msra.gmra.mrb[16].mxu0 %v736_v37  ;;  %v1518_v36 = vcombine.high %v1500_v31, %v1514_v32  ;;  %v1571_v37 = vrot.slane %v3441_v33, %v3587_v41  ;;  %v1517_v42 = vcombine.low %v1500_v31, %v1514_v32  ;;  %v3416_v31 = vld [vmem:[%s4382_s0 + $0x1e8] ss:$14 sps:$4 sm:$0x33]   ;;  %v1181_v33 = vrot.slane %v3397_v21, %v3587_v41 }
  0xbb   :  { %3182 = vmatpush3.bf16.msra.mxu0 %v3179_v19  ;;  %2180 = vmatprep.mubr.f32.mxu0 %v808_v38  ;;  %v3442_v19 = vld [vmem:[%s4382_s0 + $0x2c0] ss:$14 sps:$4 sm:$0xff]  }
  0xbc   :  { %v1585_v38 = vrot.slane %v3442_v19, %v3587_v41  ;;  %v1195_v19 = vrot.slane %v3400_v22, %v3587_v41 }
  0xbe   :  { %2181 = vmatmul.mubr.f32.gmra.mrb[18].mxu0 %v807_v44  ;;  %v1589_v43 = vcombine.high %v1571_v37, %v1585_v38  ;;  %v1642_v44 = vrot.slane %v3449_v39, %v3587_v41  ;;  %v1588_v48 = vcombine.low %v1571_v37, %v1585_v38  ;;  %v1252_v38 = vrot.slane %v3405_v26, %v3587_v41 }
  0xbf   :  { %2185 = vmatprep.mubr.f32.mxu0 %v879_v45  ;;  %v1656_v45 = vrot.slane %v3450_v40, %v3587_v41  ;;  %v1266_v39 = vrot.slane %v3408_v27, %v3587_v41  ;;  %v3429_v40 = vld [vmem:[%s4382_s0 + $0x23c] ss:$14 sps:$4 sm:$0x33]  }
  0xc1   :  { %v1660_v49 = vcombine.high %v1642_v44, %v1656_v45  ;;  %v1659_v54 = vcombine.low %v1642_v44, %v1656_v45  ;;  %v1337_v45 = vrot.slane %v3416_v31, %v3587_v41 }
  0xc2   :  { %2186 = vmatmul.mubr.f32.gmra.mrb[20].mxu0 %v878_v50  ;;  %v1713_v50 = vrot.slane %v3457_v46, %v3587_v41  ;;  %v3437_v46 = vld [vmem:[%s4382_s0 + $0x274] ss:$14 sps:$4 sm:$0x33]  }
  0xc3   :  { %2190 = vmatprep.mubr.f32.mxu0 %v950_v51  ;;  %v1727_v51 = vrot.slane %v3458_v47, %v3587_v41  ;;  %v3440_v47 = vld [vmem:[%s4382_s0 + $0x290] ss:$14 sps:$4 sm:$0x33]   ;;  %v1536_v59 = vrot.slane %v3437_v46, %v3587_v41 }
  0xc6   :  { %2191 = vmatmul.mubr.f32.gmra.mrb[22].mxu0 %v949_v56  ;;  %v3352_v56 = vld [vmem:[%s4382_s0 + $0x28] ss:$14 sps:$4 sm:$0x33]  }
  0xc7   :  { %2195 = vmatprep.mubr.f32.mxu0 %v1021_v57  ;;  %v1731_v57 = vcombine.high %v1713_v50, %v1727_v51  ;;  %v769_v3 = vrot.slane %v3352_v56, %v3587_v41  ;;  %v3453_v56 = vld [vmem:[%s4382_s0 + $0x2e4] ss:$14 sps:$4 sm:$0x33]  }
  0xca   :  { %2196 = vmatmul.mubr.f32.gmra.mrb[24].mxu0 %v1020_v62  ;;  %v1730_v62 = vcombine.low %v1713_v50, %v1727_v51  ;;  %v3445_v51 = vld [vmem:[%s4382_s0 + $0x2ac] ss:$14 sps:$4 sm:$0x33]  }
  0xcb   :  { %2200 = vmatprep.mubr.f32.mxu0 %v1092_v63  ;;  %v3365_v63 = vld [vmem:[%s4382_s0 + $0x7c] ss:$14 sps:$4 sm:$0x33]   ;;  %v1607_v0 = vrot.slane %v3445_v51, %v3587_v41 }
  0xcc   :  { %v897_v12 = vrot.slane %v3365_v63, %v3587_v41 }
  0xce   :  { %2201 = vmatmul.mubr.f32.gmra.mrb[26].mxu0 %v1091_v4  ;;  %v826_v4 = vrot.slane %v3357_v60, %v3587_v41  ;;  %v914_v23 = vcombine.low %v897_v12, %v911_v13  ;;  %v1550_v60 = vrot.slane %v3440_v47, %v3587_v41 }
  0xcf   :  { %2205 = vmatprep.mubr.f32.mxu0 %v1163_v5  ;;  %v840_v5 = vrot.slane %v3360_v61, %v3587_v41  ;;  %v3461_v61 = vld [vmem:[%s4382_s0 + $0x31c] ss:$14 sps:$4 sm:$0x33]  }
  0xd1   :  { %v843_v14 = vcombine.low %v826_v4, %v840_v5  ;;  %v1553_v4 = vcombine.low %v1536_v59, %v1550_v60  ;;  %v1678_v5 = vrot.slane %v3453_v56, %v3587_v41 }
  0xd2   :  { %2206 = vmatmul.mubr.f32.gmra.mrb[28].mxu0 %v1162_v10  ;;  %v3384_v10 = vld [vmem:[%s4382_s0 + $0x108] ss:$14 sps:$4 sm:$0x33]  }
  0xd3   :  { %2210 = vmatprep.mubr.f32.mxu0 %v1234_v11  ;;  %v772_v11 = vcombine.low %v755_v2, %v769_v3  ;;  %v3469_v2 = vld [vmem:[%s4382_s0 + $0x354] ss:$14 sps:$4 sm:$0x33]   ;;  %v3472_v3 = vld [vmem:[%s4382_s0 + $0x370] ss:$14 sps:$4 sm:$0x33]  }
  0xd4   :  { %v1834_v12 = vrot.slane %v3472_v3, %v3587_v41 }
  0xd6   :  { %2211 = vmatmul.mubr.f32.gmra.mrb[30].mxu0 %v1233_v16  ;;  %v3392_v16 = vld [vmem:[%s4382_s0 + $0x140] ss:$14 sps:$4 sm:$0x33]  }
  0xd7   :  { %2215 = vmatprep.mubr.f32.mxu0 %v1305_v18  ;;  %v968_v18 = vrot.slane %v3373_v6, %v3587_v41 }
  0xd9   :  { %v985_v17 = vcombine.low %v968_v18, %v982_v20 }
  0xda   :  { %2216 = vmatmul.mubr.f32.gmra.mrb[32].mxu0 %v1304_v24  ;;  %v1039_v24 = vrot.slane %v3381_v9, %v3587_v41 }
  0xdb   :  { %2220 = vmatprep.mubr.f32.mxu0 %v1376_v25  ;;  %v1053_v25 = vrot.slane %v3384_v10, %v3587_v41 }
  0xdd   :  { %v1056_v32 = vcombine.low %v1039_v24, %v1053_v25 }
  0xde   :  { %2221 = vmatmul.mubr.f32.gmra.mrb[34].mxu0 %v1375_v29  ;;  %v1124_v29 = vrot.slane %v3392_v16, %v3587_v41 }
  0xdf   :  { %2225 = vmatprep.mubr.f32.mxu0 %v1447_v30  ;;  %v3413_v30 = vld [vmem:[%s4382_s0 + $0x1cc] ss:$14 sps:$4 sm:$0x33]  }
  0xe0   :  { %v1127_v37 = vcombine.low %v1110_v28, %v1124_v29  ;;  %v1323_v44 = vrot.slane %v3413_v30, %v3587_v41 }
  0xe2   :  { %2226 = vmatmul.mubr.f32.gmra.mrb[36].mxu0 %v1446_v34  ;;  %v3421_v34 = vld [vmem:[%s4382_s0 + $0x204] ss:$14 sps:$4 sm:$0x33]   ;;  %v1340_v53 = vcombine.low %v1323_v44, %v1337_v45 }
  0xe3   :  { %2230 = vmatprep.mubr.f32.mxu0 %v1518_v36  ;;  %v3424_v36 = vld [vmem:[%s4382_s0 + $0x220] ss:$14 sps:$4 sm:$0x33]  }
  0xe4   :  { %v1408_v50 = vrot.slane %v3424_v36, %v3587_v41 }
  0xe6   :  { %2231 = vmatmul.mubr.f32.gmra.mrb[38].mxu0 %v1517_v42  ;;  %v3432_v42 = vld [vmem:[%s4382_s0 + $0x258] ss:$14 sps:$4 sm:$0x33]  }
  0xe7   :  { %2235 = vmatprep.mubr.f32.mxu0 %v1589_v43  ;;  %v1198_v43 = vcombine.low %v1181_v33, %v1195_v19  ;;  %v1479_v55 = vrot.slane %v3432_v42, %v3587_v41 }
  0xea   :  { %2236 = vmatmul.mubr.f32.gmra.mrb[40].mxu0 %v1588_v48  ;;  %v1269_v48 = vcombine.low %v1252_v38, %v1266_v39 }
  0xeb   :  { %2240 = vmatprep.mubr.f32.mxu0 %v1660_v49  ;;  %v1394_v49 = vrot.slane %v3421_v34, %v3587_v41 }
  0xed   :  { %v1411_v58 = vcombine.low %v1394_v49, %v1408_v50 }
  0xee   :  { %2241 = vmatmul.mubr.f32.gmra.mrb[42].mxu0 %v1659_v54  ;;  %v1465_v54 = vrot.slane %v3429_v40, %v3587_v41 }
  0xef   :  { %2245 = vmatprep.mubr.f32.mxu0 %v1731_v57  ;;  %v3456_v57 = vld [vmem:[%s4382_s0 + $0x300] ss:$14 sps:$4 sm:$0x33]  }
  0xf0   :  { %v1482_v63 = vcombine.low %v1465_v54, %v1479_v55  ;;  %v1692_v6 = vrot.slane %v3456_v57, %v3587_v41 }
  0xf2   :  { %2246 = vmatmul.mubr.f32.gmra.mrb[44].mxu0 %v1730_v62  ;;  %v3464_v62 = vld [vmem:[%s4382_s0 + $0x338] ss:$14 sps:$4 sm:$0x33]   ;;  %v1695_v10 = vcombine.low %v1678_v5, %v1692_v6  ;;  %v3507_v5 = vmov 0.0|0.0  }
  0xf3   :  { %2250 = vmatprep.mubr.f32.mxu0 %v1802_v1  ;;  %v1621_v1 = vrot.slane %v3448_v52, %v3587_v41  ;;  %v1763_v9 = vrot.slane %v3464_v62, %v3587_v41  ;;  %3183 = vmatprep.subr.bf16.mxu1 %v3507_v5 }
  0xf5   :  { %v1624_v7 = vcombine.low %v1607_v0, %v1621_v1 }
  0xf6   :  { %2251 = vmatmul.mubr.f32.gmra.mrb[46].mxu0 %v1801_v8  ;;  %v1749_v8 = vrot.slane %v3461_v61, %v3587_v41 }
  0xf7   :  { %3020 = vmatprep.mubr.msk.f32.mxu0 %vm380_vm0, %v772_v11  ;;  %v1820_v11 = vrot.slane %v3469_v2, %v3587_v41 }
  0xf8   :  { %v1766_v13 = vcombine.low %v1749_v8, %v1763_v9 }
  0xf9   :  { %v1837_v18 = vcombine.low %v1820_v11, %v1834_v12 }
  0xfa   :  { %3021 = vmatmul.mubr.msk.f32.vlgmr.msra.gmra.mrb[0].mxu0 %vm380_vm0, %v843_v14 }
  0xfb   :  { %3023 = vmatprep.mubr.msk.f32.mxu0 %vm380_vm0, %v914_v23 }
  0xfe   :  { %3024 = vmatmul.mubr.msk.f32.gmra.mrb[2].mxu0 %vm380_vm0, %v985_v17 }
  0xff   :  { %3026 = vmatprep.mubr.msk.f32.mxu0 %vm380_vm0, %v1056_v32 }
 0x102   :  { %3027 = vmatmul.mubr.msk.f32.gmra.mrb[4].mxu0 %vm380_vm0, %v1127_v37 }
 0x103   :  { %3029 = vmatprep.mubr.msk.f32.mxu0 %vm380_vm0, %v1198_v43 }
 0x106   :  { %3030 = vmatmul.mubr.msk.f32.gmra.mrb[6].mxu0 %vm380_vm0, %v1269_v48 }
 0x107   :  { %3032 = vmatprep.mubr.msk.f32.mxu0 %vm380_vm0, %v1340_v53 }
 0x10a   :  { %3033 = vmatmul.mubr.msk.f32.gmra.mrb[8].mxu0 %vm380_vm0, %v1411_v58 }
 0x10b   :  { %3035 = vmatprep.mubr.msk.f32.mxu0 %vm380_vm0, %v1482_v63 }
 0x10c   :  { %v2745_v14 = vpop.f32.mrb[0].mxu1 }
 0x10d   :  { %v2746_v15 = vpop.f32.mrb[1].mxu1 }
 0x10e   :  { %3036 = vmatmul.mubr.msk.f32.gmra.mrb[10].mxu0 %vm380_vm0, %v1553_v4  ;;  %v4247_v16 = vadd.f32 %v2746_v15, %v2745_v14 }
 0x10f   :  { %3038 = vmatprep.mubr.msk.f32.mxu0 %vm380_vm0, %v1624_v7 }
 0x110   :  { %v2748_v20 = vpop.f32.mrb[2].mxu1 }
 0x111   :  { %v2749_v21 = vpop.f32.mrb[3].mxu1 }
 0x112   :  { %3039 = vmatmul.mubr.msk.f32.gmra.mrb[12].mxu0 %vm380_vm0, %v1695_v10  ;;  %v4251_v22 = vadd.f32 %v2749_v21, %v2748_v20 }
 0x113   :  { %3041 = vmatprep.mubr.msk.f32.mxu0 %vm380_vm0, %v1766_v13 }
 0x114   :  { %v2751_v23 = vpop.f32.mrb[4].mxu1 }
 0x115   :  { %v2752_v41 = vpop.f32.mrb[5].mxu1 }
 0x116   :  { %3042 = vmatmul.mubr.msk.f32.gmra.mrb[14].mxu0 %vm380_vm0, %v1837_v18  ;;  %v4254_v24 = vadd.f32 %v2752_v41, %v2751_v23  ;;  %vm3508_vm0 = vmmov 0  }
 0x117   :  { %3076 = vmatprep.mubr.msk.f32.mxu1 %vm3508_vm0, %v3506_v35 }
 0x118   :  { %v2754_v25 = vpop.f32.mrb[6].mxu1 }
 0x119   :  { %v2755_v26 = vpop.f32.mrb[7].mxu1 }
 0x11a   :  { %v4256_v27 = vadd.f32 %v2755_v26, %v2754_v25 }
 0x11c   :  { %v2757_v17 = vpop.f32.mrb[8].mxu1 }
 0x11d   :  { %v2758_v28 = vpop.f32.mrb[9].mxu1 }
 0x11e   :  { %v4258_v29 = vadd.f32 %v2758_v28, %v2757_v17 }
 0x120   :  { %v2760_v30 = vpop.f32.mrb[10].mxu1 }
 0x121   :  { %v2761_v31 = vpop.f32.mrb[11].mxu1 }
 0x122   :  { %v4260_v32 = vadd.f32 %v2761_v31, %v2760_v30 }
 0x124   :  { %v2763_v33 = vpop.f32.mrb[12].mxu1 }
 0x125   :  { %v2764_v19 = vpop.f32.mrb[13].mxu1 }
 0x126   :  { %v4262_v34 = vadd.f32 %v2764_v19, %v2763_v33 }
 0x128   :  { %v2766_v36 = vpop.f32.mrb[14].mxu1 }
 0x129   :  { %v2767_v37 = vpop.f32.mrb[15].mxu1 }
 0x12a   :  { %v4264_v38 = vadd.f32 %v2767_v37, %v2766_v36 }
 0x12c   :  { %v2769_v39 = vpop.f32.mrb[16].mxu1 }
 0x12d   :  { %v2770_v40 = vpop.f32.mrb[17].mxu1 }
 0x12e   :  { %v4266_v42 = vadd.f32 %v2770_v40, %v2769_v39 }
 0x130   :  { %v2772_v43 = vpop.f32.mrb[18].mxu1 }
 0x131   :  { %v2773_v44 = vpop.f32.mrb[19].mxu1 }
 0x132   :  { %v4268_v45 = vadd.f32 %v2773_v44, %v2772_v43 }
 0x134   :  { %v2775_v46 = vpop.f32.mrb[20].mxu1 }
 0x135   :  { %v2776_v47 = vpop.f32.mrb[21].mxu1 }
 0x136   :  { %v4270_v48 = vadd.f32 %v2776_v47, %v2775_v46 }
 0x138   :  { %v2778_v49 = vpop.f32.mrb[22].mxu1 }
 0x139   :  { %v2779_v50 = vpop.f32.mrb[23].mxu1 }
 0x13a   :  { %v4272_v51 = vadd.f32 %v2779_v50, %v2778_v49 }
 0x13c   :  { %v2781_v52 = vpop.f32.mrb[24].mxu1 }
 0x13d   :  { %v2782_v53 = vpop.f32.mrb[25].mxu1 }
 0x13e   :  { %v4274_v54 = vadd.f32 %v2782_v53, %v2781_v52 }
 0x140   :  { %v2784_v55 = vpop.f32.mrb[26].mxu1 }
 0x141   :  { %v2785_v56 = vpop.f32.mrb[27].mxu1 }
 0x142   :  { %v4276_v57 = vadd.f32 %v2785_v56, %v2784_v55 }
 0x144   :  { %v2787_v58 = vpop.f32.mrb[28].mxu1 }
 0x145   :  { %v2788_v59 = vpop.f32.mrb[29].mxu1 }
 0x146   :  { %v4278_v60 = vadd.f32 %v2788_v59, %v2787_v58 }
 0x148   :  { %v2790_v61 = vpop.f32.mrb[30].mxu1 }
 0x149   :  { %v2791_v62 = vpop.f32.mrb[31].mxu1 }
 0x14a   :  { %v4280_v63 = vadd.f32 %v2791_v62, %v2790_v61 }
 0x14c   :  { %v2905_v0 = vpop.f32.mrb[32].mxu1 }
 0x14d   :  { %v2906_v1 = vpop.f32.mrb[33].mxu1 }
 0x14e   :  { %v2907_v2 = vadd.f32 %v2906_v1, %v2905_v0 }
 0x150   :  { %v2908_v3 = vpop.f32.mrb[34].mxu1 }
 0x151   :  { %v2909_v4 = vpop.f32.mrb[35].mxu1 }
 0x152   :  { %v2910_v6 = vadd.f32 %v2909_v4, %v2908_v3 }
 0x154   :  { %v2911_v7 = vpop.f32.mrb[36].mxu1 }
 0x155   :  { %v2912_v8 = vpop.f32.mrb[37].mxu1 }
 0x156   :  { %v2913_v9 = vadd.f32 %v2912_v8, %v2911_v7 }
 0x158   :  { %v2914_v10 = vpop.f32.mrb[38].mxu1 }
 0x159   :  { %v2915_v11 = vpop.f32.mrb[39].mxu1 }
 0x15a   :  { %v2916_v12 = vadd.f32 %v2915_v11, %v2914_v10 }
 0x15c   :  { %v2917_v13 = vpop.f32.mrb[40].mxu1 }
 0x15d   :  { %v2918_v14 = vpop.f32.mrb[41].mxu1 }
 0x15e   :  { %v4283_v15 = vadd.f32 %v2918_v14, %v2917_v13 }
 0x160   :  { %v2920_v18 = vpop.f32.mrb[42].mxu1 }
 0x161   :  { %v2921_v20 = vpop.f32.mrb[43].mxu1 }
 0x162   :  { %v4285_v21 = vadd.f32 %v2921_v20, %v2920_v18 }
 0x164   :  { %v2923_v23 = vpop.f32.mrb[44].mxu1 }
 0x165   :  { %v2924_v41 = vpop.f32.mrb[45].mxu1 }
 0x166   :  { %v4287_v25 = vadd.f32 %v2924_v41, %v2923_v23 }
 0x168   :  { %v2926_v26 = vpop.f32.mrb[46].mxu1 }
 0x169   :  { %v2927_v17 = vpop.f32.mrb[47].mxu1 }
 0x16a   :  { %v4289_v28 = vadd.f32 %v2927_v17, %v2926_v26 }
 0x16c   :  { %v2929_v30 = vpop.f32.mrb[48].mxu1 }
 0x16d   :  { %v2930_v31 = vpop.f32.mrb[49].mxu1 }
 0x16e   :  { %v4291_v33 = vadd.f32 %v2930_v31, %v2929_v30 }
 0x170   :  { %v2932_v19 = vpop.f32.mrb[50].mxu1 }
 0x171   :  { %v2933_v36 = vpop.f32.mrb[51].mxu1 }
 0x172   :  { %v4293_v37 = vadd.f32 %v2933_v36, %v2932_v19 }
 0x174   :  { %v2935_v39 = vpop.f32.mrb[52].mxu1 }
 0x175   :  { %v2936_v40 = vpop.f32.mrb[53].mxu1 }
 0x176   :  { %v4295_v43 = vadd.f32 %v2936_v40, %v2935_v39 }
 0x178   :  { %v2938_v44 = vpop.f32.mrb[54].mxu1 }
 0x179   :  { %v2939_v46 = vpop.f32.mrb[55].mxu1 }
 0x17a   :  { %v4297_v47 = vadd.f32 %v2939_v46, %v2938_v44 }
 0x17c   :  { %v2941_v49 = vpop.f32.mrb[56].mxu1 }
 0x17d   :  { %v2942_v50 = vpop.f32.mrb[57].mxu1 }
 0x17e   :  { %v4299_v52 = vadd.f32 %v2942_v50, %v2941_v49 }
 0x180   :  { %v2944_v53 = vpop.f32.mrb[58].mxu1 }
 0x181   :  { %v2945_v55 = vpop.f32.mrb[59].mxu1 }
 0x182   :  { %v4301_v56 = vadd.f32 %v2945_v55, %v2944_v53 }
 0x184   :  { %v2947_v58 = vpop.f32.mrb[60].mxu1 }
 0x185   :  { %v2948_v59 = vpop.f32.mrb[61].mxu1 }
 0x186   :  { %v4303_v61 = vadd.f32 %v2948_v59, %v2947_v58 }
 0x188   :  { %v2950_v62 = vpop.f32.mrb[62].mxu1 }
 0x189   :  { %v2951_v0 = vpop.f32.mrb[63].mxu1 }
 0x18a   :  { %v4305_v3 = vadd.f32 %v2951_v0, %v2950_v62 }
 0x18d   :  { %v2825_v1 = vpop.f32.mrb[16].mxu0 }
 0x18e   :  { %v2826_v4 = vpop.f32.mrb[17].mxu0 }
 0x18f   :  { %v2827_v7 = vadd.f32 %v2826_v4, %v2825_v1 }
 0x191   :  { %v3210_v8 = vadd.f32 %v2827_v7, %v4247_v16  ;;  %v2828_v10 = vpop.f32.mrb[18].mxu0 }
 0x192   :  { %v2829_v11 = vpop.f32.mrb[19].mxu0 }
 0x193   :  { %v2830_v13 = vadd.f32 %v2829_v11, %v2828_v10  ;;  %v4309_v14 = vadd.f32 %v3210_v8, %v2907_v2 }
 0x195   :  { %v3207_v18 = vadd.f32 %v2830_v13, %v4251_v22  ;;  %v2831_v20 = vpop.f32.mrb[20].mxu0 }
 0x196   :  { %v2832_v23 = vpop.f32.mrb[21].mxu0 }
 0x197   :  { %v2833_v41 = vadd.f32 %v2832_v23, %v2831_v20  ;;  %v4312_v26 = vadd.f32 %v3207_v18, %v2910_v6 }
 0x199   :  { %v3216_v17 = vadd.f32 %v2833_v41, %v4254_v24  ;;  %v2834_v30 = vpop.f32.mrb[22].mxu0 }
 0x19a   :  { %v2835_v31 = vpop.f32.mrb[23].mxu0 }
 0x19b   :  { %v2836_v35 = vadd.f32 %v2835_v31, %v2834_v30  ;;  %v4315_v19 = vadd.f32 %v3216_v17, %v2913_v9 }
 0x19d   :  { %v3213_v16 = vadd.f32 %v2836_v35, %v4256_v27  ;;  %v2837_v36 = vpop.f32.mrb[24].mxu0 }
 0x19e   :  { %v2838_v39 = vpop.f32.mrb[25].mxu0 }
 0x19f   :  { %v2839_v2 = vadd.f32 %v2838_v39, %v2837_v36  ;;  %v4318_v40 = vadd.f32 %v3213_v16, %v2916_v12 }
 0x1a1   :  { %v3222_v22 = vadd.f32 %v2839_v2, %v4258_v29  ;;  %v2840_v44 = vpop.f32.mrb[26].mxu0 }
 0x1a2   :  { %v2841_v46 = vpop.f32.mrb[27].mxu0 }
 0x1a3   :  { %v2842_v6 = vadd.f32 %v2841_v46, %v2840_v44  ;;  %v4322_v49 = vadd.f32 %v3222_v22, %v4283_v15 }
 0x1a5   :  { %v3219_v24 = vadd.f32 %v2842_v6, %v4260_v32  ;;  %v2843_v50 = vpop.f32.mrb[28].mxu0 }
 0x1a6   :  { %v2844_v9 = vpop.f32.mrb[29].mxu0 }
 0x1a7   :  { %v2845_v53 = vadd.f32 %v2844_v9, %v2843_v50  ;;  %v4326_v27 = vadd.f32 %v3219_v24, %v4285_v21 }
 0x1a9   :  { %v3228_v55 = vadd.f32 %v2845_v53, %v4262_v34  ;;  %v2846_v12 = vpop.f32.mrb[30].mxu0 }
 0x1aa   :  { %v2847_v58 = vpop.f32.mrb[31].mxu0 }
 0x1ab   :  { %v2848_v59 = vadd.f32 %v2847_v58, %v2846_v12  ;;  %v4330_v29 = vadd.f32 %v3228_v55, %v4287_v25 }
 0x1ad   :  { %v3225_v62 = vadd.f32 %v2848_v59, %v4264_v38  ;;  %v2849_v15 = vpop.f32.mrb[32].mxu0 }
 0x1ae   :  { %v2850_v0 = vpop.f32.mrb[33].mxu0 }
 0x1af   :  { %v2851_v1 = vadd.f32 %v2850_v0, %v2849_v15  ;;  %v3226_v32 = vadd.f32 %v3225_v62, %v4289_v28 }
 0x1b1   :  { %v3234_v4 = vadd.f32 %v2851_v1, %v4266_v42  ;;  %v2852_v7 = vpop.f32.mrb[34].mxu0 }
 0x1b2   :  { %v2853_v21 = vpop.f32.mrb[35].mxu0 }
 0x1b3   :  { %v2854_v8 = vadd.f32 %v2853_v21, %v2852_v7  ;;  %v4336_v34 = vadd.f32 %v3234_v4, %v4291_v33 }
 0x1b5   :  { %v3231_v10 = vadd.f32 %v2854_v8, %v4268_v45  ;;  %v2855_v11 = vpop.f32.mrb[36].mxu0 }
 0x1b6   :  { %v2856_v25 = vpop.f32.mrb[37].mxu0 }
 0x1b7   :  { %v2857_v13 = vadd.f32 %v2856_v25, %v2855_v11  ;;  %v3232_v38 = vadd.f32 %v3231_v10, %v4293_v37 }
 0x1b9   :  { %v3240_v18 = vadd.f32 %v2857_v13, %v4270_v48  ;;  %v2858_v20 = vpop.f32.mrb[38].mxu0 }
 0x1ba   :  { %v2859_v23 = vpop.f32.mrb[39].mxu0 }
 0x1bb   :  { %v2860_v28 = vadd.f32 %v2859_v23, %v2858_v20  ;;  %v4342_v42 = vadd.f32 %v3240_v18, %v4295_v43 }
 0x1bd   :  { %v3237_v41 = vadd.f32 %v2860_v28, %v4272_v51  ;;  %v2861_v17 = vpop.f32.mrb[40].mxu0 }
 0x1be   :  { %v2862_v33 = vpop.f32.mrb[41].mxu0 }
 0x1bf   :  { %v2863_v30 = vadd.f32 %v2862_v33, %v2861_v17  ;;  %v3238_v45 = vadd.f32 %v3237_v41, %v4297_v47 }
 0x1c1   :  { %v3246_v31 = vadd.f32 %v2863_v30, %v4274_v54  ;;  %v2864_v35 = vpop.f32.mrb[42].mxu0 }
 0x1c2   :  { %v2865_v16 = vpop.f32.mrb[43].mxu0 }
 0x1c3   :  { %v2866_v37 = vadd.f32 %v2865_v16, %v2864_v35  ;;  %v4348_v48 = vadd.f32 %v3246_v31, %v4299_v52 }
 0x1c5   :  { %v3243_v36 = vadd.f32 %v2866_v37, %v4276_v57  ;;  %v2867_v39 = vpop.f32.mrb[44].mxu0 }
 0x1c6   :  { %v2868_v43 = vpop.f32.mrb[45].mxu0 }
 0x1c7   :  { %v2869_v2 = vadd.f32 %v2868_v43, %v2867_v39  ;;  %v3244_v51 = vadd.f32 %v3243_v36, %v4301_v56 }
 0x1c9   :  { %v3252_v22 = vadd.f32 %v2869_v2, %v4278_v60  ;;  %v2870_v44 = vpop.f32.mrb[46].mxu0 }
 0x1ca   :  { %v2871_v46 = vpop.f32.mrb[47].mxu0 }
 0x1cb   :  { %v2872_v47 = vadd.f32 %v2871_v46, %v2870_v44  ;;  %v3253_v54 = vadd.f32 %v3252_v22, %v4303_v61 }
 0x1cd   :  { %v3249_v6 = vadd.f32 %v2872_v47, %v4280_v63  ;;  %v3022_v24 = vpop.f32.mrb[0].mxu0 }
 0x1ce   :  { %v3209_v52 = vadd.f32 %v4312_v26, %v3022_v24  ;;  %v2467_v50 = vpop.f32.mrb[1].mxu0 }
 0x1cf   :  { %v3212_v57 = vadd.f32 %v4309_v14, %v2467_v50  ;;  %v3250_v9 = vadd.f32 %v3249_v6, %v4305_v3 }
 0x1d0   :  { %v2547_v53 = vmax.f32 %v3209_v52, 0.0 }
 0x1d1   :  { %v2546_v55 = vmax.f32 %v3212_v57, 0.0  ;;  %v3025_v56 = vpop.f32.mrb[2].mxu0 }
 0x1d2   :  { %v3215_v60 = vadd.f32 %v4318_v40, %v3025_v56  ;;  %v2477_v12 = vpop.f32.mrb[3].mxu0 }
 0x1d3   :  { %v3184_v58 = vpack.c.bf16 %v2547_v53, %v2546_v55  ;;  %v3218_v59 = vadd.f32 %v4315_v19, %v2477_v12 }
 0x1d4   :  { %v2549_v61 = vmax.f32 %v3215_v60, 0.0 }
 0x1d5   :  { %v2548_v62 = vmax.f32 %v3218_v59, 0.0  ;;  %v3028_v63 = vpop.f32.mrb[4].mxu0  ;;  %3185 = vmatpush3.bf16.xpose.msra.mxu1 %v3184_v58 }
 0x1d6   :  { %v3221_v26 = vadd.f32 %v4326_v27, %v3028_v63  ;;  %v2487_v15 = vpop.f32.mrb[5].mxu0  ;;  %3186 = vmatprep.subr.bf16.mxu1 %v3507_v5 }
 0x1d7   :  { %v3187_v14 = vpack.c.bf16 %v2549_v61, %v2548_v62  ;;  %v3224_v3 = vadd.f32 %v4322_v49, %v2487_v15 }
 0x1d8   :  { %v2551_v0 = vmax.f32 %v3221_v26, 0.0 }
 0x1d9   :  { %v2550_v1 = vmax.f32 %v3224_v3, 0.0  ;;  %v3031_v4 = vpop.f32.mrb[6].mxu0 }
 0x1da   :  { %v3227_v40 = vadd.f32 %v3226_v32, %v3031_v4  ;;  %v2497_v7 = vpop.f32.mrb[7].mxu0 }
 0x1db   :  { %v3190_v21 = vpack.c.bf16 %v2551_v0, %v2550_v1  ;;  %v3230_v19 = vadd.f32 %v4330_v29, %v2497_v7 }
 0x1dc   :  { %v2553_v8 = vmax.f32 %v3227_v40, 0.0 }
 0x1dd   :  { %v2552_v10 = vmax.f32 %v3230_v19, 0.0  ;;  %v3034_v11 = vpop.f32.mrb[8].mxu0  ;;  %3188 = vmatpush3.bf16.xpose.msra.mxu1 %v3187_v14 }
 0x1de   :  { %v3233_v25 = vadd.f32 %v3232_v38, %v3034_v11  ;;  %v2507_v27 = vpop.f32.mrb[9].mxu0  ;;  %3189 = vmatprep.subr.bf16.mxu1 %v3507_v5 }
 0x1df   :  { %v3193_v13 = vpack.c.bf16 %v2553_v8, %v2552_v10  ;;  %v3236_v18 = vadd.f32 %v4336_v34, %v2507_v27 }
 0x1e0   :  { %v2555_v49 = vmax.f32 %v3233_v25, 0.0 }
 0x1e1   :  { %v2554_v20 = vmax.f32 %v3236_v18, 0.0  ;;  %v3037_v23 = vpop.f32.mrb[10].mxu0 }
 0x1e2   :  { %v3239_v28 = vadd.f32 %v3238_v45, %v3037_v23  ;;  %v2517_v32 = vpop.f32.mrb[11].mxu0 }
 0x1e3   :  { %v3196_v41 = vpack.c.bf16 %v2555_v49, %v2554_v20  ;;  %v3242_v17 = vadd.f32 %v4342_v42, %v2517_v32 }
 0x1e4   :  { %v2557_v29 = vmax.f32 %v3239_v28, 0.0 }
 0x1e5   :  { %v2556_v33 = vmax.f32 %v3242_v17, 0.0  ;;  %v3040_v30 = vpop.f32.mrb[12].mxu0  ;;  %3191 = vmatpush3.bf16.xpose.msra.mxu1 %v3190_v21 }
 0x1e6   :  { %v3245_v31 = vadd.f32 %v3244_v51, %v3040_v30  ;;  %v2527_v38 = vpop.f32.mrb[13].mxu0  ;;  %3192 = vmatprep.subr.bf16.mxu1 %v3507_v5  ;;  %v2564_v51 = vstv %s4387_s5 }
 0x1e7   :  { %v3199_v35 = vpack.c.bf16 %v2557_v29, %v2556_v33  ;;  %v3248_v16 = vadd.f32 %v4348_v48, %v2527_v38  ;;  %v2562_v48 = vld [vmem:[%s4386_s4] sm:$0xff] }
 0x1e8   :  { %v2559_v34 = vmax.f32 %v3245_v31, 0.0 }
 0x1e9   :  { %v2558_v37 = vmax.f32 %v3248_v16, 0.0  ;;  %v3043_v36 = vpop.f32.mrb[14].mxu0 }
 0x1ea   :  { %v3251_v39 = vadd.f32 %v3250_v9, %v3043_v36  ;;  %v2537_v45 = vpop.f32.mrb[15].mxu0 }
 0x1eb   :  { %v3202_v43 = vpack.c.bf16 %v2559_v34, %v2558_v37  ;;  %v3254_v2 = vadd.f32 %v3253_v54, %v2537_v45 }
 0x1ec   :  { %v2561_v22 = vmax.f32 %v3251_v39, 0.0 }
 0x1ed   :  { %v2560_v42 = vmax.f32 %v3254_v2, 0.0  ;;  %3194 = vmatpush3.bf16.xpose.msra.mxu1 %v3193_v13 }
 0x1ee   :  { %3195 = vmatprep.subr.bf16.mxu1 %v3507_v5 }
 0x1ef   :  { %v3205_v44 = vpack.c.bf16 %v2561_v22, %v2560_v42 }
 0x1f5   :  { %3197 = vmatpush3.bf16.xpose.msra.mxu1 %v3196_v41 }
 0x1f6   :  { %3198 = vmatprep.subr.bf16.mxu1 %v3507_v5 }
 0x1fd   :  { %3200 = vmatpush3.bf16.xpose.msra.mxu1 %v3199_v35 }
 0x1fe   :  { %3201 = vmatprep.subr.bf16.mxu1 %v3507_v5 }
 0x205   :  { %3203 = vmatpush3.bf16.xpose.msra.mxu1 %v3202_v43 }
 0x206   :  { %3204 = vmatprep.subr.bf16.mxu1 %v3507_v5 }
 0x20d   :  { %3206 = vmatpush3.bf16.xpose.msra.mxu1 %v3205_v44 }
 0x214   :  { %3077 = vmatmul.mubr.f32.vlgmr.msra.gmra.mrb[64].mxu1 %v2562_v48 }
 0x2e7   :  { %v2631_v46 = vpop.f32.mrb[64].mxu1 }
 0x2e8   :  { %v2632_v47 = vadd.f32 %v2631_v46, %v2564_v51  ;;  %v3078_v54 = vpop.f32.mrb[65].mxu1 }
 0x2ea   :  { %v2635_v6 = vsub.f32 0.0, %v2632_v47 }
 0x2ec   :  { %v2636_v24 = vmul.f32 1.442695, %v2635_v6 }
 0x2ee   :  { %3473 = vpow2.f32 %v2636_v24 }
 0x2f8   :  { %v3474_v52 = vpop.eup %3473 }
 0x2f9   :  { %v2638_v50 = vadd.f32 1.0, %v3474_v52 }
 0x2fb   :  { %3475 = vrcp.f32 %v2638_v50 }
 0x305   :  { %v3476_v5 = vpop.eup %3475 }
 0x306   :  { %2641 = vst [vmem:[%s4388_s6] sm:$0xff] %v3476_v5 }
 0x307   :  { %2646 = vsyncpa [#allocation4], 1 }

</bundles_post_ra>
